<compile_context>
chip_gen: v7x
topology: tpu7x:2x2x1
jax: 0.10.0
libtpu: 0.0.40
codegen_flags: <defaults>
</compile_context>

<pallas_src>
import functools

import jax
import jax.numpy as jnp
from jax import lax
from jax.experimental import pallas as pl
from jax.experimental.pallas import tpu as pltpu


# ---- exact port of the PyTorch helper -------------------------------------
def get_padding_shape(filter_shape, stride):
    def _pad_top_bottom(filter_dim, stride_val):
        pad_along = max(filter_dim - stride_val, 0)
        pad_top = pad_along // 2
        pad_bottom = pad_along - pad_top
        return (pad_top, pad_bottom)

    padding_shape = []
    for filter_dim, stride_val in zip(filter_shape, stride):
        pad_top, pad_bottom = _pad_top_bottom(filter_dim, stride_val)
        padding_shape.append(pad_top)
        padding_shape.append(pad_bottom)
    depth_top = padding_shape.pop(0)
    depth_bottom = padding_shape.pop(0)
    padding_shape.append(depth_top)
    padding_shape.append(depth_bottom)
    return tuple(padding_shape)


def _resolve_pads(kernel_size, stride, padding):
    """Returns ((pd0,pd1),(ph0,ph1),(pw0,pw1)) exactly as the torch module applies them."""
    if padding == "SAME":
        ps = get_padding_shape(kernel_size, stride)
        # torch.nn.ConstantPad3d reads the 6-tuple as (W_l, W_r, H_t, H_b, D_f, D_b)
        # while the module builds it as (H,H,W,W,D,D); reproduce that mapping exactly.
        return (ps[4], ps[5]), (ps[2], ps[3]), (ps[0], ps[1])
    return (0, 0), (0, 0), (0, 0)


def _sl(start, size, stride):
    return pl.ds(start, size) if stride == 1 else pl.ds(start, size, stride)


def _cdiv_py(a, b):
    return -(-a // b)


# ---- Pallas kernel ---------------------------------------------------------
def _maxpool3d_kernel(x_ref, o_ref, acc_ref, res_ref, *, kernel_size, stride, pads):
    """One (batch, channel-tile) block, NCDHW layout.

    x_ref   : (tC, D, H, W)       un-padded input block
    o_ref   : (tC, Do, Ho, Wo)    final pooled output block (stride pick folded in)
    acc_ref : (tC, Do, Ho, W)     scratch: D/H-pooled, W untouched (used only when
                                  some (kd,kh) tap has partial output coverage)
    res_ref : (tC, Do, Ho, Wm)    scratch: + W-pooled at pre-stride resolution
    """
    kT, kH, kW = kernel_size
    sT, sH, sW = stride
    (pd0, pd1), (ph0, ph1), (pw0, pw1) = pads

    tC, D, H, W = x_ref.shape
    _, Do, Ho, Wo = o_ref.shape
    Wm = res_ref.shape[-1]
    dt = x_ref.dtype
    if jnp.issubdtype(dt, jnp.floating):
        lowest = float(jnp.finfo(dt).min)
    else:
        lowest = int(jnp.iinfo(dt).min)

    # ---------------- stage 1: pool D (major dim) and H (sublane dim) -------
    # For each (kd, kh) tap only the output planes/rows whose source index is in
    # bounds are touched; the zero-pad contribution is added once at the end via a
    # max-with-0 on border output positions.
    full_taps, part_taps = [], []
    for kd in range(kT):
        do_lo = max(0, _cdiv_py(pd0 - kd, sT))
        do_hi = min(Do - 1, (D - 1 + pd0 - kd) // sT)
        if do_hi < do_lo:
            continue
        nd = do_hi - do_lo + 1
        d0 = do_lo * sT + kd - pd0
        for kh in range(kH):
            ho_lo = max(0, _cdiv_py(ph0 - kh, sH))
            ho_hi = min(Ho - 1, (H - 1 + ph0 - kh) // sH)
            if ho_hi < ho_lo:
                continue
            nh = ho_hi - ho_lo + 1
            h0 = ho_lo * sH + kh - ph0
            tap = (do_lo, nd, d0, ho_lo, nh, h0)
            (full_taps if (nd == Do and nh == Ho) else part_taps).append(tap)

    def _read_tap(tap):
        _, nd, d0, _, nh, h0 = tap
        return x_ref[:, _sl(d0, nd, sT), _sl(h0, nh, sH), :]

    acc_val = None
    for tap in full_taps:
        v = _read_tap(tap)
        acc_val = v if acc_val is None else jnp.maximum(acc_val, v)

    use_acc_ref = bool(part_taps)
    if use_acc_ref:
        acc_ref[...] = (acc_val if acc_val is not None
                        else jnp.full(acc_ref.shape, lowest, dt))
        for tap in part_taps:
            do_lo, nd, _, ho_lo, nh, _ = tap
            cur = acc_ref[:, pl.ds(do_lo, nd), pl.ds(ho_lo, nh), :]
            acc_ref[:, pl.ds(do_lo, nd), pl.ds(ho_lo, nh), :] = jnp.maximum(
                cur, _read_tap(tap))

    def _acc_cols(src, nw):
        if use_acc_ref:
            return acc_ref[:, :, :, pl.ds(src, nw)]
        return acc_val[:, :, :, src:src + nw]

    # ---------------- stage 2: pool W (lane axis) at pre-stride resolution ---
    full_w, part_w = [], []
    for kw in range(kW):
        w_lo = max(0, pw0 - kw)
        w_hi = min(Wm - 1, W - 1 + pw0 - kw)
        if w_hi < w_lo:
            continue
        nw = w_hi - w_lo + 1
        src = w_lo + kw - pw0
        (full_w if nw == Wm else part_w).append((w_lo, nw, src))

    res_val = None
    for (_, nw, src) in full_w:
        v = _acc_cols(src, nw)
        res_val = v if res_val is None else jnp.maximum(res_val, v)

    if part_w:
        res_ref[...] = (res_val if res_val is not None
                        else jnp.full(res_ref.shape, lowest, dt))
        for (w_lo, nw, src) in part_w:
            cur = res_ref[:, :, :, pl.ds(w_lo, nw)]
            res_ref[:, :, :, pl.ds(w_lo, nw)] = jnp.maximum(cur, _acc_cols(src, nw))
        res = res_ref[...]
    else:
        res = res_val

    # ---------------- stride-sW pick along W, folded into the kernel ---------
    if sW > 1:
        # One-hot selection matmul (lane compaction without lane-strided slices).
        # MXU is otherwise idle; HIGHEST precision keeps the f32 pick exact.
        # TODO(synk): +/-inf inputs would turn the 0*inf products into NaN here.
        b = tC * Do
        lhs = res.astype(jnp.float32).reshape(b, Ho, Wm)
        col = lax.broadcasted_iota(jnp.int32, (b, Wm, Wo), 1)
        sel = lax.broadcasted_iota(jnp.int32, (b, Wm, Wo), 2) * sW
        rhs = (col == sel).astype(jnp.float32)
        picked = jnp.einsum("bhw,bwo->bho", lhs, rhs,
                            preferred_element_type=jnp.float32,
                            precision=lax.Precision.HIGHEST)
        picked = picked.reshape(tC, Do, Ho, Wo)
    else:
        picked = res  # Wm == Wo when sW == 1

    # ---------------- zero padding participates in the max -------------------
    if any(p > 0 for p in (pd0, pd1, ph0, ph1, pw0, pw1)):
        oshape = picked.shape

        def _or(a, b):
            return b if a is None else (a | b)

        touch = None
        if pd0 or pd1:
            dio = lax.broadcasted_iota(jnp.int32, oshape, 1) * sT
            touch = _or(touch, (dio < pd0) | (dio >= pd0 + D - kT + 1))
        if ph0 or ph1:
            hio = lax.broadcasted_iota(jnp.int32, oshape, 2) * sH
            touch = _or(touch, (hio < ph0) | (hio >= ph0 + H - kH + 1))
        if pw0 or pw1:
            wio = lax.broadcasted_iota(jnp.int32, oshape, 3) * sW
            touch = _or(touch, (wio < pw0) | (wio >= pw0 + W - kW + 1))
        zero = jnp.zeros((), picked.dtype)
        picked = jnp.where(touch, jnp.maximum(picked, zero), picked)

    o_ref[...] = picked.astype(o_ref.dtype)


# ---- wrapper: single pallas_call, no pad/slice/transpose left in XLA --------
def maxpool3d_tf_padding(x, kernel_size, stride, padding="SAME"):
    """TF-'SAME' zero-padded 3D max pool on an NCDHW tensor (PyTorch layout)."""
    N, C, D, H, W = x.shape
    kT, kH, kW = kernel_size
    sT, sH, sW = stride
    pad_d, pad_h, pad_w = _resolve_pads(kernel_size, stride, padding)

    Dp, Hp, Wp = D + sum(pad_d), H + sum(pad_h), W + sum(pad_w)
    Do = (Dp - kT) // sT + 1
    Ho = (Hp - kH) // sH + 1
    Wo = (Wp - kW) // sW + 1
    Wm = Wp - kW + 1  # W pooled at pre-stride resolution (intermediate only)
    isz = jnp.dtype(x.dtype).itemsize

    # --- generation-aware VMEM budget (v5e/v6e: 128 MiB, v7x: 64 MiB) --------
    try:
        vmem_cap = int(pltpu.get_tpu_info().vmem_capacity_bytes)
    except Exception:  # pragma: no cover - conservative fallback
        vmem_cap = 64 * 1024 * 1024
    budget = int(vmem_cap * 0.55)

    def vmem_need(tc):
        in_b = tc * D * H * W * isz
        out_b = tc * Do * Ho * Wo * isz
        acc_b = tc * Do * Ho * W * isz
        res_b = tc * Do * Ho * Wm * isz
        pick_b = tc * Do * (Wm * Wo + Ho * Wo + Ho * Wm) * 4 if sW > 1 else 0
        # 2x for the double-buffered pipeline blocks, 2x slack on scratch/temps.
        return 2 * in_b + 2 * out_b + 2 * (acc_b + res_b) + pick_b

    tC = 1
    for cand in range(1, C + 1):
        if vmem_need(cand) <= budget:
            tC = cand
    # v7x has two TensorCores per chip: keep at least 2 grid steps when possible.
    if N * pl.cdiv(C, tC) < 2 and C > 1:
        tC = pl.cdiv(C, 2)
    grid = (N, pl.cdiv(C, tC))

    need = vmem_need(tC)
    vmem_limit = int(min(max(need * 3 // 2 + (4 << 20), 32 << 20),
                         int(vmem_cap * 0.9)))

    kernel = functools.partial(
        _maxpool3d_kernel,
        kernel_size=(kT, kH, kW),
        stride=(sT, sH, sW),
        pads=(pad_d, pad_h, pad_w),
    )

    cost = pl.CostEstimate(
        flops=int(N * C * Do * Ho * (kT * kH * W + kW * Wm
                                     + (2 * Wm * Wo if sW > 1 else 0))),
        transcendentals=0,
        bytes_accessed=int((N * C * D * H * W + N * C * Do * Ho * Wo) * isz),
    )

    return pl.pallas_call(
        kernel,
        out_shape=jax.ShapeDtypeStruct((N, C, Do, Ho, Wo), x.dtype),
        grid=grid,
        in_specs=[pl.BlockSpec((None, tC, D, H, W), lambda n, c: (n, c, 0, 0, 0))],
        out_specs=pl.BlockSpec((None, tC, Do, Ho, Wo), lambda n, c: (n, c, 0, 0, 0)),
        scratch_shapes=[
            pltpu.VMEM((tC, Do, Ho, W), x.dtype),
            pltpu.VMEM((tC, Do, Ho, Wm), x.dtype),
        ],
        compiler_params=pltpu.CompilerParams(
            dimension_semantics=("parallel", "parallel"),
            vmem_limit_bytes=vmem_limit,
        ),
        cost_estimate=cost,
    )(x)


# ---- pure-JAX reference (mirrors the PyTorch module) ------------------------
def _reference(x, kernel_size, stride, padding="SAME"):
    pad_d, pad_h, pad_w = _resolve_pads(kernel_size, stride, padding)
    xp = jnp.pad(x, ((0, 0), (0, 0), pad_d, pad_h, pad_w), constant_values=0)
    return jax.lax.reduce_window(
        xp,
        -jnp.inf,
        jax.lax.max,
        window_dimensions=(1, 1) + tuple(kernel_size),
        window_strides=(1, 1) + tuple(stride),
        padding="VALID",
    )


if __name__ == "__main__":
    key = jax.random.PRNGKey(0)
    # NCDHW: batch=2, channels=4, depth=8, height=16, width=16
    x = jax.random.normal(key, (2, 4, 8, 16, 16), dtype=jnp.float32)

    configs = [
        ((3, 3, 3), (2, 2, 2)),   # I3D pool (strided, back pad 1 on all axes)
        ((1, 3, 3), (1, 2, 2)),   # I3D pool (spatial only)
        ((3, 3, 3), (1, 1, 1)),   # symmetric front+back padding path
        ((2, 2, 2), (2, 2, 2)),   # no-padding path
    ]
    for kernel_size, stride in configs:
        out = jax.block_until_ready(
            maxpool3d_tf_padding(x, kernel_size, stride, padding="SAME"))
        ref = jax.block_until_ready(_reference(x, kernel_size, stride, "SAME"))
        assert out.shape == ref.shape, (kernel_size, stride, out.shape, ref.shape)
        assert jnp.allclose(out, ref, atol=1e-5, rtol=1e-5), (kernel_size, stride)

    print("KERNEL_OK")
</pallas_src>

<mosaic_0001>
module attributes {stable_mosaic.version = 11 : i64} {
  func.func @_maxpool3d_kernel(%arg0: i32, %arg1: i32, %arg2: memref<1x4x8x16x16xf32, #tpu.memory_space<vmem>>, %arg3: memref<1x4x4x8x8xf32, #tpu.memory_space<vmem>>, %arg4: memref<4x4x8x16xf32, #tpu.memory_space<vmem>>, %arg5: memref<4x4x8x15xf32, #tpu.memory_space<vmem>>) attributes {dimension_semantics = [#tpu.dimension_semantics<parallel>, #tpu.dimension_semantics<parallel>], iteration_bounds = array<i64: 2, 1>, scalar_prefetch = 0 : i64, scratch_operands = 2 : i64, tpu.core_type = #tpu.core_type<tc>, window_params = [{transform_indices = @transform_0, window_bounds = array<i64: 1, 4, 8, 16, 16>}, {transform_indices = @transform_1, window_bounds = array<i64: 1, 4, 4, 8, 8>}]} {
    %c0 = arith.constant 0 : index
    %c0_0 = arith.constant 0 : index
    %c0_1 = arith.constant 0 : index
    %c0_2 = arith.constant 0 : index
    %c0_3 = arith.constant 0 : index
    %0 = tpu.strided_load %arg2[%c0, %c0_0, %c0_1, %c0_2, %c0_3] {strides = array<i32: 1, 1, 2, 2, 1>} : memref<1x4x8x16x16xf32, #tpu.memory_space<vmem>>, vector<1x4x4x8x16xf32>
    %1 = vector.shape_cast %0 : vector<1x4x4x8x16xf32> to vector<4x4x8x16xf32>
    %c0_4 = arith.constant 0 : index
    %c0_5 = arith.constant 0 : index
    %c0_6 = arith.constant 0 : index
    %c1 = arith.constant 1 : index
    %c0_7 = arith.constant 0 : index
    %2 = tpu.strided_load %arg2[%c0_4, %c0_5, %c0_6, %c1, %c0_7] {strides = array<i32: 1, 1, 2, 2, 1>} : memref<1x4x8x16x16xf32, #tpu.memory_space<vmem>>, vector<1x4x4x8x16xf32>
    %3 = vector.shape_cast %2 : vector<1x4x4x8x16xf32> to vector<4x4x8x16xf32>
    %4 = arith.maximumf %1, %3 : vector<4x4x8x16xf32>
    %c0_8 = arith.constant 0 : index
    %c0_9 = arith.constant 0 : index
    %c1_10 = arith.constant 1 : index
    %c0_11 = arith.constant 0 : index
    %c0_12 = arith.constant 0 : index
    %5 = tpu.strided_load %arg2[%c0_8, %c0_9, %c1_10, %c0_11, %c0_12] {strides = array<i32: 1, 1, 2, 2, 1>} : memref<1x4x8x16x16xf32, #tpu.memory_space<vmem>>, vector<1x4x4x8x16xf32>
    %6 = vector.shape_cast %5 : vector<1x4x4x8x16xf32> to vector<4x4x8x16xf32>
    %7 = arith.maximumf %4, %6 : vector<4x4x8x16xf32>
    %c0_13 = arith.constant 0 : index
    %c0_14 = arith.constant 0 : index
    %c1_15 = arith.constant 1 : index
    %c1_16 = arith.constant 1 : index
    %c0_17 = arith.constant 0 : index
    %8 = tpu.strided_load %arg2[%c0_13, %c0_14, %c1_15, %c1_16, %c0_17] {strides = array<i32: 1, 1, 2, 2, 1>} : memref<1x4x8x16x16xf32, #tpu.memory_space<vmem>>, vector<1x4x4x8x16xf32>
    %9 = vector.shape_cast %8 : vector<1x4x4x8x16xf32> to vector<4x4x8x16xf32>
    %10 = arith.maximumf %7, %9 : vector<4x4x8x16xf32>
    %c0_18 = arith.constant 0 : index
    %c0_19 = arith.constant 0 : index
    %c0_20 = arith.constant 0 : index
    %c0_21 = arith.constant 0 : index
    %11 = vector.load %arg4[%c0_18, %c0_19, %c0_20, %c0_21] : memref<4x4x8x16xf32, #tpu.memory_space<vmem>>, vector<4x4x8x16xf32>
    tpu.vector_store %arg4[%c0_18, %c0_19, %c0_20, %c0_21], %10 {strides = array<i32>} : memref<4x4x8x16xf32, #tpu.memory_space<vmem>>, vector<4x4x8x16xf32>,
    %c0_22 = arith.constant 0 : index
    %c0_23 = arith.constant 0 : index
    %c0_24 = arith.constant 0 : index
    %c0_25 = arith.constant 0 : index
    %12 = vector.load %arg4[%c0_22, %c0_23, %c0_24, %c0_25] : memref<4x4x8x16xf32, #tpu.memory_space<vmem>>, vector<4x4x7x16xf32>
    %c0_26 = arith.constant 0 : index
    %c0_27 = arith.constant 0 : index
    %c0_28 = arith.constant 0 : index
    %c2 = arith.constant 2 : index
    %c0_29 = arith.constant 0 : index
    %13 = tpu.strided_load %arg2[%c0_26, %c0_27, %c0_28, %c2, %c0_29] {strides = array<i32: 1, 1, 2, 2, 1>} : memref<1x4x8x16x16xf32, #tpu.memory_space<vmem>>, vector<1x4x4x7x16xf32>
    %14 = vector.shape_cast %13 : vector<1x4x4x7x16xf32> to vector<4x4x7x16xf32>
    %15 = arith.maximumf %12, %14 : vector<4x4x7x16xf32>
    %c0_30 = arith.constant 0 : index
    %c0_31 = arith.constant 0 : index
    %c0_32 = arith.constant 0 : index
    %c0_33 = arith.constant 0 : index
    %16 = vector.load %arg4[%c0_30, %c0_31, %c0_32, %c0_33] : memref<4x4x8x16xf32, #tpu.memory_space<vmem>>, vector<4x4x7x16xf32>
    tpu.vector_store %arg4[%c0_30, %c0_31, %c0_32, %c0_33], %15 {strides = array<i32>} : memref<4x4x8x16xf32, #tpu.memory_space<vmem>>, vector<4x4x7x16xf32>,
    %c0_34 = arith.constant 0 : index
    %c0_35 = arith.constant 0 : index
    %c0_36 = arith.constant 0 : index
    %c0_37 = arith.constant 0 : index
    %17 = vector.load %arg4[%c0_34, %c0_35, %c0_36, %c0_37] : memref<4x4x8x16xf32, #tpu.memory_space<vmem>>, vector<4x4x7x16xf32>
    %c0_38 = arith.constant 0 : index
    %c0_39 = arith.constant 0 : index
    %c1_40 = arith.constant 1 : index
    %c2_41 = arith.constant 2 : index
    %c0_42 = arith.constant 0 : index
    %18 = tpu.strided_load %arg2[%c0_38, %c0_39, %c1_40, %c2_41, %c0_42] {strides = array<i32: 1, 1, 2, 2, 1>} : memref<1x4x8x16x16xf32, #tpu.memory_space<vmem>>, vector<1x4x4x7x16xf32>
    %19 = vector.shape_cast %18 : vector<1x4x4x7x16xf32> to vector<4x4x7x16xf32>
    %20 = arith.maximumf %17, %19 : vector<4x4x7x16xf32>
    %c0_43 = arith.constant 0 : index
    %c0_44 = arith.constant 0 : index
    %c0_45 = arith.constant 0 : index
    %c0_46 = arith.constant 0 : index
    %21 = vector.load %arg4[%c0_43, %c0_44, %c0_45, %c0_46] : memref<4x4x8x16xf32, #tpu.memory_space<vmem>>, vector<4x4x7x16xf32>
    tpu.vector_store %arg4[%c0_43, %c0_44, %c0_45, %c0_46], %20 {strides = array<i32>} : memref<4x4x8x16xf32, #tpu.memory_space<vmem>>, vector<4x4x7x16xf32>,
    %c0_47 = arith.constant 0 : index
    %c0_48 = arith.constant 0 : index
    %c0_49 = arith.constant 0 : index
    %c0_50 = arith.constant 0 : index
    %22 = vector.load %arg4[%c0_47, %c0_48, %c0_49, %c0_50] : memref<4x4x8x16xf32, #tpu.memory_space<vmem>>, vector<4x3x8x16xf32>
    %c0_51 = arith.constant 0 : index
    %c0_52 = arith.constant 0 : index
    %c2_53 = arith.constant 2 : index
    %c0_54 = arith.constant 0 : index
    %c0_55 = arith.constant 0 : index
    %23 = tpu.strided_load %arg2[%c0_51, %c0_52, %c2_53, %c0_54, %c0_55] {strides = array<i32: 1, 1, 2, 2, 1>} : memref<1x4x8x16x16xf32, #tpu.memory_space<vmem>>, vector<1x4x3x8x16xf32>
    %24 = vector.shape_cast %23 : vector<1x4x3x8x16xf32> to vector<4x3x8x16xf32>
    %25 = arith.maximumf %22, %24 : vector<4x3x8x16xf32>
    %c0_56 = arith.constant 0 : index
    %c0_57 = arith.constant 0 : index
    %c0_58 = arith.constant 0 : index
    %c0_59 = arith.constant 0 : index
    %26 = vector.load %arg4[%c0_56, %c0_57, %c0_58, %c0_59] : memref<4x4x8x16xf32, #tpu.memory_space<vmem>>, vector<4x3x8x16xf32>
    tpu.vector_store %arg4[%c0_56, %c0_57, %c0_58, %c0_59], %25 {strides = array<i32>} : memref<4x4x8x16xf32, #tpu.memory_space<vmem>>, vector<4x3x8x16xf32>,
    %c0_60 = arith.constant 0 : index
    %c0_61 = arith.constant 0 : index
    %c0_62 = arith.constant 0 : index
    %c0_63 = arith.constant 0 : index
    %27 = vector.load %arg4[%c0_60, %c0_61, %c0_62, %c0_63] : memref<4x4x8x16xf32, #tpu.memory_space<vmem>>, vector<4x3x8x16xf32>
    %c0_64 = arith.constant 0 : index
    %c0_65 = arith.constant 0 : index
    %c2_66 = arith.constant 2 : index
    %c1_67 = arith.constant 1 : index
    %c0_68 = arith.constant 0 : index
    %28 = tpu.strided_load %arg2[%c0_64, %c0_65, %c2_66, %c1_67, %c0_68] {strides = array<i32: 1, 1, 2, 2, 1>} : memref<1x4x8x16x16xf32, #tpu.memory_space<vmem>>, vector<1x4x3x8x16xf32>
    %29 = vector.shape_cast %28 : vector<1x4x3x8x16xf32> to vector<4x3x8x16xf32>
    %30 = arith.maximumf %27, %29 : vector<4x3x8x16xf32>
    %c0_69 = arith.constant 0 : index
    %c0_70 = arith.constant 0 : index
    %c0_71 = arith.constant 0 : index
    %c0_72 = arith.constant 0 : index
    %31 = vector.load %arg4[%c0_69, %c0_70, %c0_71, %c0_72] : memref<4x4x8x16xf32, #tpu.memory_space<vmem>>, vector<4x3x8x16xf32>
    tpu.vector_store %arg4[%c0_69, %c0_70, %c0_71, %c0_72], %30 {strides = array<i32>} : memref<4x4x8x16xf32, #tpu.memory_space<vmem>>, vector<4x3x8x16xf32>,
    %c0_73 = arith.constant 0 : index
    %c0_74 = arith.constant 0 : index
    %c0_75 = arith.constant 0 : index
    %c0_76 = arith.constant 0 : index
    %32 = vector.load %arg4[%c0_73, %c0_74, %c0_75, %c0_76] : memref<4x4x8x16xf32, #tpu.memory_space<vmem>>, vector<4x3x7x16xf32>
    %c0_77 = arith.constant 0 : index
    %c0_78 = arith.constant 0 : index
    %c2_79 = arith.constant 2 : index
    %c2_80 = arith.constant 2 : index
    %c0_81 = arith.constant 0 : index
    %33 = tpu.strided_load %arg2[%c0_77, %c0_78, %c2_79, %c2_80, %c0_81] {strides = array<i32: 1, 1, 2, 2, 1>} : memref<1x4x8x16x16xf32, #tpu.memory_space<vmem>>, vector<1x4x3x7x16xf32>
    %34 = vector.shape_cast %33 : vector<1x4x3x7x16xf32> to vector<4x3x7x16xf32>
    %35 = arith.maximumf %32, %34 : vector<4x3x7x16xf32>
    %c0_82 = arith.constant 0 : index
    %c0_83 = arith.constant 0 : index
    %c0_84 = arith.constant 0 : index
    %c0_85 = arith.constant 0 : index
    %36 = vector.load %arg4[%c0_82, %c0_83, %c0_84, %c0_85] : memref<4x4x8x16xf32, #tpu.memory_space<vmem>>, vector<4x3x7x16xf32>
    tpu.vector_store %arg4[%c0_82, %c0_83, %c0_84, %c0_85], %35 {strides = array<i32>} : memref<4x4x8x16xf32, #tpu.memory_space<vmem>>, vector<4x3x7x16xf32>,
    %c0_86 = arith.constant 0 : index
    %c0_87 = arith.constant 0 : index
    %c0_88 = arith.constant 0 : index
    %c0_89 = arith.constant 0 : index
    %37 = vector.load %arg4[%c0_86, %c0_87, %c0_88, %c0_89] : memref<4x4x8x16xf32, #tpu.memory_space<vmem>>, vector<4x4x8x15xf32>
    %c0_90 = arith.constant 0 : index
    %c0_91 = arith.constant 0 : index
    %c0_92 = arith.constant 0 : index
    %c1_93 = arith.constant 1 : index
    %38 = vector.load %arg4[%c0_90, %c0_91, %c0_92, %c1_93] : memref<4x4x8x16xf32, #tpu.memory_space<vmem>>, vector<4x4x8x15xf32>
    %39 = arith.maximumf %37, %38 : vector<4x4x8x15xf32>
    %c0_94 = arith.constant 0 : index
    %c0_95 = arith.constant 0 : index
    %c0_96 = arith.constant 0 : index
    %c0_97 = arith.constant 0 : index
    %40 = vector.load %arg5[%c0_94, %c0_95, %c0_96, %c0_97] : memref<4x4x8x15xf32, #tpu.memory_space<vmem>>, vector<4x4x8x15xf32>
    tpu.vector_store %arg5[%c0_94, %c0_95, %c0_96, %c0_97], %39 {strides = array<i32>} : memref<4x4x8x15xf32, #tpu.memory_space<vmem>>, vector<4x4x8x15xf32>,
    %c0_98 = arith.constant 0 : index
    %c0_99 = arith.constant 0 : index
    %c0_100 = arith.constant 0 : index
    %c0_101 = arith.constant 0 : index
    %41 = vector.load %arg5[%c0_98, %c0_99, %c0_100, %c0_101] : memref<4x4x8x15xf32, #tpu.memory_space<vmem>>, vector<4x4x8x14xf32>
    %c0_102 = arith.constant 0 : index
    %c0_103 = arith.constant 0 : index
    %c0_104 = arith.constant 0 : index
    %c2_105 = arith.constant 2 : index
    %42 = vector.load %arg4[%c0_102, %c0_103, %c0_104, %c2_105] : memref<4x4x8x16xf32, #tpu.memory_space<vmem>>, vector<4x4x8x14xf32>
    %43 = arith.maximumf %41, %42 : vector<4x4x8x14xf32>
    %c0_106 = arith.constant 0 : index
    %c0_107 = arith.constant 0 : index
    %c0_108 = arith.constant 0 : index
    %c0_109 = arith.constant 0 : index
    %44 = vector.load %arg5[%c0_106, %c0_107, %c0_108, %c0_109] : memref<4x4x8x15xf32, #tpu.memory_space<vmem>>, vector<4x4x8x14xf32>
    tpu.vector_store %arg5[%c0_106, %c0_107, %c0_108, %c0_109], %43 {strides = array<i32>} : memref<4x4x8x15xf32, #tpu.memory_space<vmem>>, vector<4x4x8x14xf32>,
    %c0_110 = arith.constant 0 : index
    %c0_111 = arith.constant 0 : index
    %c0_112 = arith.constant 0 : index
    %c0_113 = arith.constant 0 : index
    %45 = vector.load %arg5[%c0_110, %c0_111, %c0_112, %c0_113] : memref<4x4x8x15xf32, #tpu.memory_space<vmem>>, vector<4x4x8x15xf32>
    %46 = vector.shape_cast %45 : vector<4x4x8x15xf32> to vector<16x8x15xf32>
    %47 = tpu.iota {dimensions = array<i32: 1>} : vector<16x15x8xi32>
    %48 = tpu.iota {dimensions = array<i32: 2>} : vector<16x15x8xi32>
    %c2_i32 = arith.constant 2 : i32
    %49 = vector.broadcast %c2_i32 : i32 to vector<16x15x8xi32>
    %50 = arith.muli %48, %49 : vector<16x15x8xi32>
    %51 = arith.cmpi eq, %47, %50 : vector<16x15x8xi32>
    %52 = arith.extui %51 : vector<16x15x8xi1> to vector<16x15x8xi32>
    %53 = arith.sitofp %52 : vector<16x15x8xi32> to vector<16x15x8xf32>
    "tpu.trace_start"() <{level = 10 : i32, message = "bhw,bwo->bho"}> : () -> ()
    %cst = arith.constant dense<0.000000e+00> : vector<16x8x8xf32>
    %54 = tpu.matmul %46, %53, %cst {dimension_numbers = #tpu.dot_dimension_numbers<[2], [1], [1], [2], [0, 0, 0, 1, 1, 2], [0], [0]>, precision = #tpu.contract_precision<fp32>} : vector<16x8x15xf32>, vector<16x15x8xf32>, vector<16x8x8xf32> -> vector<16x8x8xf32>
    "tpu.trace_stop"() : () -> ()
    %55 = vector.shape_cast %54 : vector<16x8x8xf32> to vector<4x4x8x8xf32>
    %56 = tpu.iota {dimensions = array<i32: 1>} : vector<4x4x8x8xi32>
    %c2_i32_114 = arith.constant 2 : i32
    %57 = vector.broadcast %c2_i32_114 : i32 to vector<4x4x8x8xi32>
    %58 = arith.muli %56, %57 : vector<4x4x8x8xi32>
    %c0_i32 = arith.constant 0 : i32
    %59 = vector.broadcast %c0_i32 : i32 to vector<4x4x8x8xi32>
    %60 = arith.cmpi slt, %58, %59 : vector<4x4x8x8xi32>
    %c6_i32 = arith.constant 6 : i32
    %61 = vector.broadcast %c6_i32 : i32 to vector<4x4x8x8xi32>
    %62 = arith.cmpi sge, %58, %61 : vector<4x4x8x8xi32>
    %63 = arith.ori %60, %62 : vector<4x4x8x8xi1>
    %64 = tpu.iota {dimensions = array<i32: 2>} : vector<4x4x8x8xi32>
    %c2_i32_115 = arith.constant 2 : i32
    %65 = vector.broadcast %c2_i32_115 : i32 to vector<4x4x8x8xi32>
    %66 = arith.muli %64, %65 : vector<4x4x8x8xi32>
    %c0_i32_116 = arith.constant 0 : i32
    %67 = vector.broadcast %c0_i32_116 : i32 to vector<4x4x8x8xi32>
    %68 = arith.cmpi slt, %66, %67 : vector<4x4x8x8xi32>
    %c14_i32 = arith.constant 14 : i32
    %69 = vector.broadcast %c14_i32 : i32 to vector<4x4x8x8xi32>
    %70 = arith.cmpi sge, %66, %69 : vector<4x4x8x8xi32>
    %71 = arith.ori %68, %70 : vector<4x4x8x8xi1>
    %72 = arith.ori %63, %71 : vector<4x4x8x8xi1>
    %73 = tpu.iota {dimensions = array<i32: 3>} : vector<4x4x8x8xi32>
    %c2_i32_117 = arith.constant 2 : i32
    %74 = vector.broadcast %c2_i32_117 : i32 to vector<4x4x8x8xi32>
    %75 = arith.muli %73, %74 : vector<4x4x8x8xi32>
    %c0_i32_118 = arith.constant 0 : i32
    %76 = vector.broadcast %c0_i32_118 : i32 to vector<4x4x8x8xi32>
    %77 = arith.cmpi slt, %75, %76 : vector<4x4x8x8xi32>
    %c14_i32_119 = arith.constant 14 : i32
    %78 = vector.broadcast %c14_i32_119 : i32 to vector<4x4x8x8xi32>
    %79 = arith.cmpi sge, %75, %78 : vector<4x4x8x8xi32>
    %80 = arith.ori %77, %79 : vector<4x4x8x8xi1>
    %81 = arith.ori %72, %80 : vector<4x4x8x8xi1>
    %cst_120 = arith.constant 0.000000e+00 : f32
    %82 = vector.broadcast %cst_120 : f32 to vector<4x4x8x8xf32>
    %83 = arith.maximumf %55, %82 : vector<4x4x8x8xf32>
    %84 = arith.select %81, %83, %55 : vector<4x4x8x8xi1>, vector<4x4x8x8xf32>
    %c0_121 = arith.constant 0 : index
    %c0_122 = arith.constant 0 : index
    %c0_123 = arith.constant 0 : index
    %c0_124 = arith.constant 0 : index
    %c0_125 = arith.constant 0 : index
    %85 = vector.load %arg3[%c0_121, %c0_122, %c0_123, %c0_124, %c0_125] : memref<1x4x4x8x8xf32, #tpu.memory_space<vmem>>, vector<1x4x4x8x8xf32>
    %86 = vector.shape_cast %85 : vector<1x4x4x8x8xf32> to vector<4x4x8x8xf32>
    %87 = vector.shape_cast %84 : vector<4x4x8x8xf32> to vector<1x4x4x8x8xf32>
    tpu.vector_store %arg3[%c0_121, %c0_122, %c0_123, %c0_124, %c0_125], %87 {strides = array<i32>} : memref<1x4x4x8x8xf32, #tpu.memory_space<vmem>>, vector<1x4x4x8x8xf32>,
    return
  }
  func.func @transform_0(%arg0: i32, %arg1: i32) -> (i32, i32, i32, i32, i32) {
    %c0_i32 = arith.constant 0 : i32
    %c0_i32_0 = arith.constant 0 : i32
    %c0_i32_1 = arith.constant 0 : i32
    %c0_i32_2 = arith.constant 0 : i32
    return %arg0, %arg1, %c0_i32, %c0_i32_0, %c0_i32_1 : i32, i32, i32, i32, i32
  }
  func.func @transform_1(%arg0: i32, %arg1: i32) -> (i32, i32, i32, i32, i32) {
    %c0_i32 = arith.constant 0 : i32
    %c0_i32_0 = arith.constant 0 : i32
    %c0_i32_1 = arith.constant 0 : i32
    %c0_i32_2 = arith.constant 0 : i32
    return %arg0, %arg1, %c0_i32, %c0_i32_0, %c0_i32_1 : i32, i32, i32, i32, i32
  }
}

</mosaic_0001>

<bundles_post_ra>
// kernel: tpu_custom_call.1
= control target key start
LH: loop header
LB: loop body
LE: loop exit
PB: predicated region body
PF: predicated region fallthrough
CT: control target
= control target key end

     0   :  { %6 = vsyncpa [#allocation5], 0  ;;  %s11781_s0 = inlined_call_operand.hbm [shape: f32[2,4,8,16,16], index: 0, kind: input, shape index: {}]   ;;  %s11782_s1 = inlined_call_operand.hbm [shape: f32[2,4,4,8,8], index: 1, kind: output, shape index: {}]  }
   0x1   :  { %8 = vsyncpa [#allocation5 + $0x1], 0 }
   0x2   :  { %9 = vsyncpa [#allocation6], 0 }
   0x3   :  { %11 = vsyncpa [#allocation6 + $0x1], 0  ;;  %s10511_s6 = smov 0   ;;  %s10513_s7 = smov 0  }
   0x4   :  { %s10515_s8 = smov 0   ;;  %s10517_s9 = smov 0  }
   0x5   :  { %s10519_s10 = smov 0   ;;  %s10521_s11 = smov 0  }
   0x6 LB: > { %s8601_s12 = sadd.s32 4294967295, %s10487_s11   ;;  %s8602_s13 = sadd.s32 4294967294, %s10487_s11   ;;  %s10487_s11 = sphi %s10521_s11, %s17_s11   ;;  %s10483_s10 = sphi %s10519_s10, %s11805_s10   ;;  %s10479_s9 = sphi %s10517_s9, %s11804_s9   ;;  %s10475_s8 = sphi %s10515_s8, %s11803_s8   ;;  %s10471_s7 = sphi %s10513_s7, %s11802_s7   ;;  %s10467_s6 = sphi %s10511_s6, %s11801_s6  }
   0x7   : > { %s29_s14 = sadd.s32 1, %s10483_s10  ;;  %s38_s15 = sadd.s32 1, %s10475_s8 }
   0x8   : > { %p31_p0 = scmp.ge.s32.totalorder %s29_s14, 2  ;;  %p45_p1 = scmp.ne.s32.totalorder %s10475_s8, %s10471_s7 }
   0x9   : > { %p46_p2 = scmp.eq.s32.totalorder %s10487_s11, 0  ;;  %p51_p3 = scmp.ne.s32.totalorder %s10471_s7, %s10467_s6 }
   0xa   : > { %s11807_s14 = smov (%p31_p0, %s29_s14), 0  ;;  %p52_p5 = scmp.eq.s32.totalorder %s8601_s12, 0 }
   0xb   : > { %p10552_p4 = por %p46_p2, %p45_p1  ;;  %s33_s17 = ssub.s32 %s10483_s10, %s11807_s14 }
   0xc   : > { %p77_p6 = scmp.eq.s32.totalorder %s8601_s12, 1  ;;  %p36_p7 = scmp.eq.s32.totalorder %s33_s17, 0 }
   0xd   : > { %p10558_p8 = por %p52_p5, %p51_p3  ;;  %p83_p10 = scmp.eq.s32.totalorder %s8602_s13, 1 }
   0xe   : > { %p10562_p9 = por %p77_p6, %p45_p1  ;;  %p10315_p13 = scmp.lt.s32.totalorder %s10487_s11, 2 }
   0xf   : > { %s10567_s20 = scalar_select %p36_p7, %s10475_s8, %s38_s15  }
  0x10   : > { %s11786_s19 = scalar_select %p10562_p9, 1, 0 }
  0x11   : > { %p10569_p11 = por %p83_p10, %p51_p3  ;;  %s103_s22 = sand.u32 1, %s10475_s8  }
  0x12   : > { %s8605_s23 = sshll.u32 %s103_s22, 9  ;;  %s8845_s24 = sshll.u32 %s10483_s10, 13 }
  0x13   : > { %s11787_s21 = scalar_select %p10569_p11, 1, 0 }
  0x14   : > { %s10580_s27 = scalar_lea.hbm %s11781_s0, %s8845_s24  ;;  %s107_s28 = scalar_lea.vmem [#allocation4], %s8605_s23 }
  0x15   : > { %s117_s29 = sshll.u32 %s107_s28, 4  ;;  %p10586_p0 = pnand %p10315_p13, %p10552_p4  ;;  %s10582_s29 = int_to_ptr.vmem [resolvable:$true] %s117_s29 }
  0x16   : > { %s10591_s2 = scalar_lea.sflag [#allocation5], %s103_s22  ;;  %s10375_s3 = scalar_lea.hbm %s10580_s27, 8192 }
  0x17   : > { %p10376_p2 = scmp.ne.s32.totalorder %s10580_s27, %s10375_s3  ;;  %p10377_p3 = pneg %p10586_p0 }
  0x18   : > { %s10380_s12 = scalar_lea.hbm %s11781_s0, 16384  ;;  %p10381_p4 = scmp.lt.u32.totalorder %s10580_s27, %s11781_s0 }
  0x19   : > { %p10378_p5 = pnand %p10377_p3, %p10376_p2  ;;  %p10382_p7 = scmp.lt.u32.totalorder %s10380_s12, %s10375_s3 }
  0x1a   : > { %p10384_p13 = scmp.lt.u32.totalorder %s10375_s3, %s10580_s27 }
  0x1b   : > { %p10379_p6 = pneg %p10378_p5  ;;  %p10383_p10 = por %p10382_p7, %p10381_p4 }
  0x1d   : > { %p10385_p12 = por %p10384_p13, %p10383_p10 }
  0x1f   : > { %p10386_p1 = pnand %p10385_p12, %p10379_p6 }
  0x21   : > { %10389 = shalt.err (!%p10386_p1)
}
  0x22   : > { %s10390_s16 = scalar_lea.vmem %s10582_s29, 8192  ;;  %s10489_s17 = smov [#allocation4]  }
  0x23   : > { %p10391_p2 = scmp.ne.s32.totalorder %s10582_s29, %s10390_s16  ;;  %s10395_s22 = sshll.u32 %s10489_s17, 4  ;;  %s10396_s22 = int_to_ptr.vmem [resolvable:$false] %s10395_s22 }
  0x24   : > { %s10397_s23 = scalar_lea.vmem %s10396_s22, 16384  ;;  %p10398_p9 = scmp.lt.s32.totalorder %s10582_s29, %s10396_s22 }
  0x25   : > { %p10393_p5 = pnand %p10391_p2, %p10377_p3  ;;  %p10399_p4 = scmp.lt.s32.totalorder %s10397_s23, %s10390_s16 }
  0x27   : > { %p10394_p11 = pneg %p10393_p5  ;;  %p10400_p7 = por %p10399_p4, %p10398_p9 }
  0x29   : > { %p10401_p10 = pnand %p10400_p7, %p10394_p11 }
  0x2b   : > { %10404 = shalt.err (!%p10401_p10)
}
  0x2c   : > { %s10490_s24 = smov 128   ;;  %s10491_s25 = smov 8  }
  0x2d   : > { %10310 = dma.hbm_to_vmem [thread:$0]  (!%p10586_p0), %s10580_s27, 8192, %s10582_s29, %s10591_s2, %s10490_s24, %s10490_s24, %s10491_s25  }
  0x2e   : > { %p125_p12 = scmp.lt.s32.totalorder %s10487_s11, 3  ;;  %p11789_p1 = scmp.ge.s32.totalorder %s10487_s11, 1 }
  0x30   : > { %p126_p3 = pnand %p11789_p1, %p125_p12 }
  0x31   : > { %s10623_s26 = sand.u32 (!%p126_p3), 1, %s10471_s7  }
  0x32   : > { %129 = sbr.rel (%p126_p3) target bundleno = 850 (0x352), region = 24  ;;  %s8609_s28 = sshll.u32 (!%p126_p3), %s10623_s26, 9 }
  0x33   : > { %s132_s3 = scalar_lea.sflag (!%p126_p3), [#allocation5], %s10623_s26  ;;  %s10627_s4 = scalar_lea.vmem (!%p126_p3), [#allocation4], %s8609_s28 }
  0x39   : > { %10458 = dma.done.wait (%p10558_p8), %s132_s3, 8192  }
  0x3a   : > { %10460 = vsyncadd (%p10558_p8), %s132_s3, 4294959104  ;;  %v156_v0 = vld [vmem:[%s10627_s4] ss:$2 sm:$0xff]  ;;  %v8626_v1 = vld [vmem:[%s10627_s4 + $0x1] ss:$2 sm:$0xff]  ;;  %vm331_vm0 = vcmask 130048  }
  0x3b   : > { %v8642_v2 = vld [vmem:[%s10627_s4 + $0x10] ss:$2 sm:$0xff]  ;;  %v219_v3 = vmax.f32 %v156_v0, %v8626_v1  ;;  %v8658_v4 = vld [vmem:[%s10627_s4 + $0x11] ss:$2 sm:$0xff]  ;;  %v8611_v6 = vld [vmem:[%s10627_s4 + $0x20] ss:$2 sm:$0xff] }
  0x3c   : > { %v8627_v7 = vld [vmem:[%s10627_s4 + $0x21] ss:$2 sm:$0xff]  ;;  %v8643_v8 = vld [vmem:[%s10627_s4 + $0x30] ss:$2 sm:$0xff]  ;;  %v8659_v11 = vld [vmem:[%s10627_s4 + $0x31] ss:$2 sm:$0xff] }
  0x3d   : > { %v267_v5 = vmax.f32 %v219_v3, %v8642_v2  ;;  %v220_v10 = vmax.f32 %v8611_v6, %v8627_v7  ;;  %v8612_v13 = vld [vmem:[%s10627_s4 + $0x40] ss:$2 sm:$0xff]  ;;  %v8628_v14 = vld [vmem:[%s10627_s4 + $0x41] ss:$2 sm:$0xff]  ;;  %v8644_v15 = vld [vmem:[%s10627_s4 + $0x50] ss:$2 sm:$0xff] }
  0x3e   : > { %v221_v17 = vmax.f32 %v8612_v13, %v8628_v14  ;;  %v8660_v18 = vld [vmem:[%s10627_s4 + $0x51] ss:$2 sm:$0xff]  ;;  %v8674_v19 = vld [vmem:[%s10627_s4 + $0x2] ss:$2 sm:$0x7f]  ;;  %vm412_vm1 = vcmask 129024  }
  0x3f   : > { %v315_v9 = vmax.f32 %v267_v5, %v8658_v4  ;;  %v268_v12 = vmax.f32 %v220_v10, %v8643_v8  ;;  %v8613_v21 = vld [vmem:[%s10627_s4 + $0x60] ss:$2 sm:$0xff]  ;;  %v8629_v22 = vld [vmem:[%s10627_s4 + $0x61] ss:$2 sm:$0xff]  ;;  %v8645_v23 = vld [vmem:[%s10627_s4 + $0x70] ss:$2 sm:$0xff] }
  0x40   : > { %v269_v20 = vmax.f32 %v221_v17, %v8644_v15  ;;  %v222_v25 = vmax.f32 %v8613_v21, %v8629_v22  ;;  %v8661_v27 = vld [vmem:[%s10627_s4 + $0x71] ss:$2 sm:$0xff]  ;;  %v8614_v30 = vld [vmem:[%s10627_s4 + $0x80] ss:$2 sm:$0xff]  ;;  %v8630_v31 = vld [vmem:[%s10627_s4 + $0x81] ss:$2 sm:$0xff] }
  0x41   : > { %332 = vst.msk [vmem:[#allocation2] sm:$0xff] %vm331_vm0, %v315_v9  ;;  %v316_v16 = vmax.f32 %v268_v12, %v8659_v11  ;;  %v8646_v32 = vld [vmem:[%s10627_s4 + $0x90] ss:$2 sm:$0xff]  ;;  %v8675_v33 = vld [vmem:[%s10627_s4 + $0x22] ss:$2 sm:$0x7f]  ;;  %v223_v34 = vmax.f32 %v8614_v30, %v8630_v31 }
  0x42   : > { %v317_v24 = vmax.f32 %v269_v20, %v8660_v18  ;;  %v270_v29 = vmax.f32 %v222_v25, %v8645_v23  ;;  %v8662_v36 = vld [vmem:[%s10627_s4 + $0x91] ss:$2 sm:$0xff]  ;;  %v8615_v39 = vld [vmem:[%s10627_s4 + $0xa0] ss:$2 sm:$0xff]  ;;  %v8631_v41 = vld [vmem:[%s10627_s4 + $0xa1] ss:$2 sm:$0xff] }
  0x43   : > { %333 = vst.msk [vmem:[#allocation2 + $0x8] sm:$0xff] %vm331_vm0, %v316_v16  ;;  %v271_v38 = vmax.f32 %v223_v34, %v8646_v32  ;;  %v8676_v42 = vld [vmem:[%s10627_s4 + $0x42] ss:$2 sm:$0x7f]  ;;  %v224_v44 = vmax.f32 %v8615_v39, %v8631_v41  ;;  %v8647_v45 = vld [vmem:[%s10627_s4 + $0xb0] ss:$2 sm:$0xff] }
  0x44   : > { %334 = vst.msk [vmem:[#allocation2 + $0x10] sm:$0xff] %vm331_vm0, %v317_v24  ;;  %v318_v35 = vmax.f32 %v270_v29, %v8661_v27  ;;  %v8690_v46 = vld [vmem:[%s10627_s4 + $0x12] ss:$2 sm:$0x7f]  ;;  %v8663_v47 = vld [vmem:[%s10627_s4 + $0xb1] ss:$2 sm:$0xff] }
  0x45   : > { %v319_v43 = vmax.f32 %v271_v38, %v8662_v36  ;;  %v272_v49 = vmax.f32 %v224_v44, %v8647_v45  ;;  %v8616_v50 = vld [vmem:[%s10627_s4 + $0xc0] ss:$2 sm:$0xff]  ;;  %v8632_v53 = vld [vmem:[%s10627_s4 + $0xc1] ss:$2 sm:$0xff]  ;;  %v8648_v57 = vld [vmem:[%s10627_s4 + $0xd0] ss:$2 sm:$0xff] }
  0x46   : > { %335 = vst.msk [vmem:[#allocation2 + $0x18] sm:$0xff] %vm331_vm0, %v318_v35  ;;  %v8677_v52 = vld [vmem:[%s10627_s4 + $0x62] ss:$2 sm:$0x7f]  ;;  %v225_v56 = vmax.f32 %v8616_v50, %v8632_v53  ;;  %v8664_v59 = vld [vmem:[%s10627_s4 + $0xd1] ss:$2 sm:$0xff] }
  0x47   : > { %336 = vst.msk [vmem:[#allocation2 + $0x20] sm:$0xff] %vm331_vm0, %v319_v43  ;;  %v320_v55 = vmax.f32 %v272_v49, %v8663_v47  ;;  %v8691_v60 = vld [vmem:[%s10627_s4 + $0x32] ss:$2 sm:$0x7f]  ;;  %v8706_v8 = vld [vmem:[%s10627_s4 + $0x20] ss:$2 sm:$0xff] }
  0x48   : > { %v348_v26 = vld [vmem:[#allocation2] sm:$0x7f]  ;;  %v273_v62 = vmax.f32 %v225_v56, %v8648_v57  ;;  %v8692_v5 = vld [vmem:[%s10627_s4 + $0x52] ss:$2 sm:$0x7f]  ;;  %s10492_s18 = smov 127  }
  0x49   : > { %v396_v28 = vmax.f32 %v348_v26, %v8674_v19  ;;  %337 = vst.msk [vmem:[#allocation2 + $0x28] sm:$0xff] %vm331_vm0, %v320_v55  ;;  %v8678_v0 = vld [vmem:[%s10627_s4 + $0x82] ss:$2 sm:$0x7f]  ;;  %v8633_v16 = vld [vmem:[%s10627_s4 + $0xe1] ss:$2 sm:$0xff] }
  0x4a   : > { %v349_v37 = vld [vmem:[#allocation2 + $0x8] sm:$0x7f]  ;;  %v321_v2 = vmax.f32 %v273_v62, %v8664_v59  ;;  %v8693_v11 = vld [vmem:[%s10627_s4 + $0x72] ss:$2 sm:$0x7f]  ;;  %s10493_s27 = smov 126  }
  0x4b   : > { %413 = vst.msk [vmem:[#allocation2] sm:$0x7f] %vm412_vm1, %v396_v28  ;;  %v397_v40 = vmax.f32 %v349_v37, %v8675_v33  ;;  %v350_v48 = vld [vmem:[#allocation2 + $0x10] sm:$0x7f]  ;;  %v8617_v15 = vld [vmem:[%s10627_s4 + $0xe0] ss:$2 sm:$0xff] }
  0x4c   : > { %v398_v51 = vmax.f32 %v350_v48, %v8676_v42  ;;  %338 = vst.msk [vmem:[#allocation2 + $0x30] sm:$0xff] %vm331_vm0, %v321_v2  ;;  %v8679_v7 = vld [vmem:[%s10627_s4 + $0xa2] ss:$2 sm:$0x7f]  ;;  %v226_v19 = vmax.f32 %v8617_v15, %v8633_v16  ;;  %v8649_v22 = vld [vmem:[%s10627_s4 + $0xf0] ss:$2 sm:$0xff] }
  0x4d   : > { %414 = vst.msk [vmem:[#allocation2 + $0x8] sm:$0x7f] %vm412_vm1, %v397_v40  ;;  %v351_v61 = vld [vmem:[#allocation2 + $0x18] sm:$0x7f]  ;;  %v8707_v20 = vld [vmem:[%s10627_s4 + $0x40] ss:$2 sm:$0xff] }
  0x4e   : > { %415 = vst.msk [vmem:[#allocation2 + $0x10] sm:$0x7f] %vm412_vm1, %v398_v51  ;;  %v399_v63 = vmax.f32 %v351_v61, %v8677_v52  ;;  %v352_v4 = vld [vmem:[#allocation2 + $0x20] sm:$0x7f]  ;;  %v274_v26 = vmax.f32 %v226_v19, %v8649_v22  ;;  %v8665_v29 = vld [vmem:[%s10627_s4 + $0xf1] ss:$2 sm:$0xff] }
  0x4f   : > { %v400_v6 = vmax.f32 %v352_v4, %v8678_v0  ;;  %v8680_v18 = vld [vmem:[%s10627_s4 + $0xc2] ss:$2 sm:$0x7f]  ;;  %v8694_v24 = vld [vmem:[%s10627_s4 + $0x92] ss:$2 sm:$0x7f] }
  0x50   : > { %416 = vst.msk [vmem:[#allocation2 + $0x18] sm:$0x7f] %vm412_vm1, %v399_v63  ;;  %v353_v12 = vld [vmem:[#allocation2 + $0x28] sm:$0x7f]  ;;  %v322_v32 = vmax.f32 %v274_v26, %v8665_v29  ;;  %v8650_v57 = vld [vmem:[%s10627_s4 + $0x110] ss:$2 sm:$0xff] }
  0x51   : > { %417 = vst.msk [vmem:[#allocation2 + $0x20] sm:$0x7f] %vm412_vm1, %v400_v6  ;;  %v401_v14 = vmax.f32 %v353_v12, %v8679_v7  ;;  %v8708_v33 = vld [vmem:[%s10627_s4 + $0x60] ss:$2 sm:$0xff]  ;;  %v8718_v36 = vld [vmem:[%s10627_s4 + $0x21] ss:$2 sm:$0xff] }
  0x52   : > { %v429_v54 = vld [vmem:[#allocation2] sm:$0x7f]  ;;  %v8695_v35 = vld [vmem:[%s10627_s4 + $0xb2] ss:$2 sm:$0x7f]  ;;  %339 = vst.msk [vmem:[#allocation2 + $0x38] sm:$0xff] %vm331_vm0, %v322_v32 }
  0x53   : > { %v477_v58 = vmax.f32 %v429_v54, %v8690_v46  ;;  %418 = vst.msk [vmem:[#allocation2 + $0x28] sm:$0x7f] %vm412_vm1, %v401_v14  ;;  %v354_v25 = vld [vmem:[#allocation2 + $0x30] sm:$0x7f]  ;;  %v8719_v44 = vld [vmem:[%s10627_s4 + $0x41] ss:$2 sm:$0xff] }
  0x54   : > { %v430_v1 = vld [vmem:[#allocation2 + $0x8] sm:$0x7f]  ;;  %v402_v28 = vmax.f32 %v354_v25, %v8680_v18  ;;  %v8696_v43 = vld [vmem:[%s10627_s4 + $0xd2] ss:$2 sm:$0x7f]  ;;  %vm10495_vm2 = vmmov 0  }
  0x55   : > { %493 = vst.msk [vmem:[#allocation2] sm:$0x7f] %vm412_vm1, %v477_v58  ;;  %v478_v3 = vmax.f32 %v430_v1, %v8691_v60  ;;  %v431_v9 = vld [vmem:[#allocation2 + $0x10] sm:$0x7f]  ;;  %v8709_v45 = vld [vmem:[%s10627_s4 + $0xa0] ss:$2 sm:$0xff] }
  0x56   : > { %v479_v10 = vmax.f32 %v431_v9, %v8692_v5  ;;  %419 = vst.msk [vmem:[#allocation2 + $0x30] sm:$0x7f] %vm412_vm1, %v402_v28  ;;  %v8618_v47 = vld [vmem:[%s10627_s4 + $0x100] ss:$2 sm:$0xff]  ;;  %v8720_v49 = vld [vmem:[%s10627_s4 + $0x61] ss:$2 sm:$0xff] }
  0x57   : > { %494 = vst.msk [vmem:[#allocation2 + $0x8] sm:$0x7f] %vm412_vm1, %v478_v3  ;;  %v432_v21 = vld [vmem:[#allocation2 + $0x18] sm:$0x7f]  ;;  %v8634_v56 = vld [vmem:[%s10627_s4 + $0x101] ss:$2 sm:$0xff] }
  0x58   : > { %495 = vst.msk [vmem:[#allocation2 + $0x10] sm:$0x7f] %vm412_vm1, %v479_v10  ;;  %v480_v23 = vmax.f32 %v432_v21, %v8693_v11  ;;  %v433_v31 = vld [vmem:[#allocation2 + $0x20] sm:$0x7f]  ;;  %v227_v59 = vmax.f32 %v8618_v47, %v8634_v56  ;;  %v8651_v62 = vld [vmem:[%s10627_s4 + $0x130] ss:$2 sm:$0xff] }
  0x59   : > { %v481_v34 = vmax.f32 %v433_v31, %v8694_v24  ;;  %v355_v51 = vld [vmem:[#allocation2 + $0x38] sm:$0x7f]  ;;  %v8681_v52 = vld [vmem:[%s10627_s4 + $0xe2] ss:$2 sm:$0x7f]  ;;  %vm962_vm3 = vcmask 1046528  }
  0x5a   : > { %496 = vst.msk [vmem:[#allocation2 + $0x18] sm:$0x7f] %vm412_vm1, %v480_v23  ;;  %v434_v39 = vld [vmem:[#allocation2 + $0x28] sm:$0x7f]  ;;  %v403_v55 = vmax.f32 %v355_v51, %v8681_v52  ;;  %v8666_v0 = vld [vmem:[%s10627_s4 + $0x111] ss:$2 sm:$0xff]  ;;  %v275_v4 = vmax.f32 %v227_v59, %v8650_v57 }
  0x5b   : > { %497 = vst.msk [vmem:[#allocation2 + $0x20] sm:$0x7f] %vm412_vm1, %v481_v34  ;;  %v482_v41 = vmax.f32 %v434_v39, %v8695_v35  ;;  %v8619_v60 = vld [vmem:[%s10627_s4 + $0x120] ss:$2 sm:$0xff]  ;;  %v8635_v61 = vld [vmem:[%s10627_s4 + $0x121] ss:$2 sm:$0xff] }
  0x5c   : > { %v509_v13 = vld [vmem:[#allocation2] sm:$0xff]  ;;  %420 = vst.msk [vmem:[#allocation2 + $0x38] sm:$0x7f] %vm412_vm1, %v403_v55  ;;  %v228_v1 = vmax.f32 %v8619_v60, %v8635_v61  ;;  %v8667_v5 = vld [vmem:[%s10627_s4 + $0x131] ss:$2 sm:$0xff]  ;;  %v323_v11 = vmax.f32 %v275_v4, %v8666_v0  ;;  %v10496_v51 = vmov 0.0  }
  0x5d   : > { %v545_v17 = vmax.f32 %v509_v13, %v8706_v8  ;;  %498 = vst.msk [vmem:[#allocation2 + $0x28] sm:$0x7f] %vm412_vm1, %v482_v41  ;;  %v435_v46 = vld [vmem:[#allocation2 + $0x30] sm:$0x7f]  ;;  %v8710_v63 = vld [vmem:[%s10627_s4 + $0xc0] ss:$2 sm:$0xff]  ;;  %9139 = vmatprep.mubr.msk.f32.mxu0 %vm10495_vm2, %v10496_v51  ;;  %9181 = vmatprep.mubr.msk.f32.mxu1 %vm10495_vm2, %v10496_v51 }
  0x5e   : > { %v510_v27 = vld [vmem:[#allocation2 + $0x8] sm:$0xff]  ;;  %v483_v50 = vmax.f32 %v435_v46, %v8696_v43  ;;  %v276_v8 = vmax.f32 %v228_v1, %v8651_v62  ;;  %340 = vst.msk [vmem:[#allocation2 + $0x40] sm:$0xff] %vm331_vm0, %v323_v11  ;;  %v8697_v23 = vld [vmem:[%s10627_s4 + $0xf2] ss:$2 sm:$0x7f]  ;;  %vm785_vm7 = vcmask 121856  }
  0x5f   : > { %557 = vst.msk [vmem:[#allocation2] sm:$0xff] %vm331_vm0, %v545_v17  ;;  %v546_v30 = vmax.f32 %v510_v27, %v8707_v20  ;;  %v511_v37 = vld [vmem:[#allocation2 + $0x10] sm:$0xff]  ;;  %v8730_v2 = vld [vmem:[%s10627_s4 + $0x22] ss:$2 sm:$0x7f]  ;;  %vm914_vm8 = vcmask 113664  }
  0x60   : > { %v547_v38 = vmax.f32 %v511_v37, %v8708_v33  ;;  %499 = vst.msk [vmem:[#allocation2 + $0x30] sm:$0x7f] %vm412_vm1, %v483_v50  ;;  %v8711_v13 = vld [vmem:[%s10627_s4 + $0xe0] ss:$2 sm:$0xff]  ;;  %v324_v14 = vmax.f32 %v276_v8, %v8667_v5  ;;  %v8721_v16 = vld [vmem:[%s10627_s4 + $0xa1] ss:$2 sm:$0xff] }
  0x61   : > { %558 = vst.msk [vmem:[#allocation2 + $0x8] sm:$0xff] %vm331_vm0, %v546_v30  ;;  %v8731_v15 = vld [vmem:[%s10627_s4 + $0x42] ss:$2 sm:$0x7f]  ;;  %v8722_v27 = vld [vmem:[%s10627_s4 + $0xc1] ss:$2 sm:$0xff] }
  0x62   : > { %559 = vst.msk [vmem:[#allocation2 + $0x10] sm:$0xff] %vm331_vm0, %v547_v38  ;;  %v512_v54 = vld [vmem:[#allocation2 + $0x20] sm:$0xff]  ;;  %341 = vst.msk [vmem:[#allocation2 + $0x48] sm:$0xff] %vm331_vm0, %v324_v14  ;;  %v10761_v46 = vld [vmem:[#allocation2 + $0x18] sm:$0xff]  ;;  %s8610_s29 = sshll.u32 %s10623_s26, 7  ;;  %s8846_s2 = sshll.u32 %s10479_s9, 11 }
  0x63   : > { %v548_v58 = vmax.f32 %v512_v54, %v8709_v45  ;;  %v436_v20 = vld [vmem:[#allocation2 + $0x38] sm:$0x7f]  ;;  %v8732_v24 = vld [vmem:[%s10627_s4 + $0x62] ss:$2 sm:$0x7f]  ;;  %s11520_s30 = scalar_lea.vmem [#allocation7], %s8610_s29  ;;  %s11728_s15 = scalar_lea.hbm %s11782_s1, %s8846_s2 }
  0x64   : > { %v513_v7 = vld [vmem:[#allocation2 + $0x28] sm:$0xff]  ;;  %v484_v26 = vmax.f32 %v436_v20, %v8697_v23  ;;  %v8699_v57 = vld [vmem:[%s10627_s4 + $0x132] ss:$2 sm:$0x7f]  ;;  %s8432_s5 = sshll.u32 %s11520_s30, 4  ;;  %s8416_s9 = scalar_lea.sflag [#allocation6], %s10623_s26  ;;  %s11730_s5 = int_to_ptr.vmem [resolvable:$true] %s8432_s5 }
  0x65   : > { %560 = vst.msk [vmem:[#allocation2 + $0x20] sm:$0xff] %vm331_vm0, %v548_v58  ;;  %v549_v10 = vmax.f32 %v513_v7, %v8710_v63  ;;  %v8682_v28 = vld [vmem:[%s10627_s4 + $0x102] ss:$2 sm:$0x7f]  ;;  %v8723_v38 = vld [vmem:[%s10627_s4 + $0xe1] ss:$2 sm:$0xff] }
  0x66   : > { %v569_v40 = vld [vmem:[#allocation2] sm:$0xff]  ;;  %500 = vst.msk [vmem:[#allocation2 + $0x38] sm:$0x7f] %vm412_vm1, %v484_v26  ;;  %s10405_s16 = scalar_lea.vmem %s11730_s5, 2048  ;;  %p11798_p9 = scmp.ne.s32.totalorder %s11786_s19, 0 }
  0x67   : > { %v605_v42 = vmax.f32 %v569_v40, %v8718_v36  ;;  %561 = vst.msk [vmem:[#allocation2 + $0x28] sm:$0xff] %vm331_vm0, %v549_v10  ;;  %v514_v17 = vld [vmem:[#allocation2 + $0x30] sm:$0xff]  ;;  %v8683_v30 = vld [vmem:[%s10627_s4 + $0x122] ss:$2 sm:$0x7f]  ;;  %p10406_p8 = scmp.ne.s32.totalorder %s11730_s5, %s10405_s16  ;;  %s10498_s17 = smov [#allocation7]  }
  0x68   : > { %v570_v48 = vld [vmem:[#allocation2 + $0x8] sm:$0xff]  ;;  %v550_v19 = vmax.f32 %v514_v17, %v8711_v13  ;;  %v356_v33 = vld [vmem:[#allocation2 + $0x40] sm:$0x7f]  ;;  %s10409_s22 = sshll.u32 %s10498_s17, 4  ;;  %s10410_s22 = int_to_ptr.vmem [resolvable:$false] %s10409_s22 }
  0x69   : > { %617 = vst.msk [vmem:[#allocation2] sm:$0xff] %vm331_vm0, %v605_v42  ;;  %v606_v53 = vmax.f32 %v570_v48, %v8719_v44  ;;  %v571_v3 = vld [vmem:[#allocation2 + $0x10] sm:$0xff]  ;;  %v404_v36 = vmax.f32 %v356_v33, %v8682_v28  ;;  %v357_v37 = vld [vmem:[#allocation2 + $0x48] sm:$0x7f]  ;;  %v947_v44 = vlaneseq  ;;  %v10494_v48 = vmov 0.0|0.0   ;;  %p10407_p11 = pnand %p10406_p8, %p11798_p9  ;;  %s10411_s23 = scalar_lea.vmem %s10410_s22, 4096 }
  0x6a   : > { %v607_v6 = vmax.f32 %v571_v3, %v8720_v49  ;;  %562 = vst.msk [vmem:[#allocation2 + $0x30] sm:$0xff] %vm331_vm0, %v550_v19  ;;  %v405_v39 = vmax.f32 %v357_v37, %v8683_v30  ;;  %v8733_v40 = vld [vmem:[%s10627_s4 + $0xa2] ss:$2 sm:$0x7f]  ;;  %9807 = vmatprep.subr.bf16.mxu0 %v10494_v48  ;;  %9828 = vmatprep.subr.bf16.mxu1 %v10494_v48  ;;  %v10497_v3 = vmov 1.0   ;;  %p10412_p6 = scmp.lt.s32.totalorder %s11730_s5, %s10410_s22  ;;  %p10413_p13 = scmp.lt.s32.totalorder %s10411_s23, %s10405_s16 }
  0x6b   : > { %618 = vst.msk [vmem:[#allocation2 + $0x8] sm:$0xff] %vm331_vm0, %v606_v53  ;;  %v10765_v49 = vshrl.u32 %v947_v44, 7  ;;  %v951_v50 = vand.u32 127, %v947_v44  ;;  %v8734_v52 = vld [vmem:[%s10627_s4 + $0xc2] ss:$2 sm:$0x7f]  ;;  %p10408_p0 = pneg %p10407_p11 }
  0x6c   : > { %619 = vst.msk [vmem:[#allocation2 + $0x10] sm:$0xff] %vm331_vm0, %v607_v6  ;;  %v572_v22 = vld [vmem:[#allocation2 + $0x20] sm:$0xff]  ;;  %v8698_v53 = vld [vmem:[%s10627_s4 + $0x112] ss:$2 sm:$0x7f]  ;;  %p10414_p2 = por %p10413_p13, %p10412_p6 }
  0x6d   : > { %v608_v25 = vmax.f32 %v572_v22, %v8721_v16  ;;  %421 = vst.msk [vmem:[#allocation2 + $0x40] sm:$0x7f] %vm412_vm1, %v404_v36  ;;  %422 = vst.msk [vmem:[#allocation2 + $0x48] sm:$0x7f] %vm412_vm1, %v405_v39  ;;  %v949_v55 = vadd.s32 8, %v10765_v49  ;;  %v10778_v56 = vmul.u32 2, %v951_v50 }
  0x6e   : > { %v573_v32 = vld [vmem:[#allocation2 + $0x28] sm:$0xff]  ;;  %v8652_v36 = vld [vmem:[%s10627_s4 + $0x150] ss:$2 sm:$0xff]  ;;  %p10415_p5 = pnand %p10414_p2, %p10408_p0 }
  0x6f   : > { %620 = vst.msk [vmem:[#allocation2 + $0x20] sm:$0xff] %vm331_vm0, %v608_v25  ;;  %v609_v35 = vmax.f32 %v573_v32, %v8722_v27  ;;  %vm953_vm4 = vcmp.eq.s32.totalorder %v10765_v49, %v10778_v56  ;;  %vm954_vm5 = vcmp.eq.s32.totalorder %v949_v55, %v10778_v56  ;;  %v8735_v63 = vld [vmem:[%s10627_s4 + $0xe2] ss:$2 sm:$0x7f]  ;;  %v10837_v27 = vld [vmem:[#allocation2 + $0x38] sm:$0xff]  ;;  %vm8361_vm11 = vcmp.lt.s32.totalorder %v10778_v56, 0 }
  0x70   : > { %v629_v9 = vld [vmem:[#allocation2] sm:$0x7f]  ;;  %v8743_v0 = vsel %vm954_vm5, 1.0, %v10496_v51  ;;  %vm10791_vm6 = vmpackc.low %vm962_vm3, %vm953_vm4  ;;  %v8742_v6 = vsel %vm953_vm4, 1.0, %v10496_v51  ;;  %vm8362_vm12 = vcmp.ge.s32.totalorder %v10778_v56, 14 }
  0x71   : > { %v665_v12 = vmax.f32 %v629_v9, %v8730_v2  ;;  %621 = vst.msk [vmem:[#allocation2 + $0x28] sm:$0xff] %vm331_vm0, %v609_v35  ;;  %v574_v41 = vld [vmem:[#allocation2 + $0x30] sm:$0xff]  ;;  %v10796_v4 = vpack.c.bf16 %v8743_v0, %v10497_v3  ;;  %v964_v7 = vsel %vm962_vm3, %v8743_v0, 0  ;;  %v1045_v9 = vsub.f32 %v8742_v6, %v8742_v6  ;;  %v8712_v14 = vld [vmem:[%s10627_s4 + $0x120] ss:$2 sm:$0xff]  ;;  %vm8363_vm14 = vmor %vm8361_vm11, %vm8362_vm12 }
  0x72   : > { %v630_v18 = vld [vmem:[#allocation2 + $0x8] sm:$0x7f]  ;;  %v610_v43 = vmax.f32 %v574_v41, %v8723_v38  ;;  %v1052_v10 = vsub.f32 %v964_v7, %v964_v7  ;;  %v8668_v41 = vld [vmem:[%s10627_s4 + $0x151] ss:$2 sm:$0xff]  ;;  %v8653_v6 = vld [vmem:[%s10627_s4 + $0x170] ss:$2 sm:$0xff] }
  0x73   : > { %677 = vst.msk [vmem:[#allocation2] sm:$0x7f] %vm412_vm1, %v665_v12  ;;  %v666_v21 = vmax.f32 %v630_v18, %v8731_v15  ;;  %v631_v29 = vld [vmem:[#allocation2 + $0x10] sm:$0x7f]  ;;  %9810 = vmatpush3.bf16.msk.msra.mxu0 %vm10791_vm6, %v10796_v4  ;;  %9831 = vmatpush3.bf16.msk.msra.mxu1 %vm10791_vm6, %v10796_v4  ;;  %v1046_v12 = vand.u32 4294901760, %v1045_v9 }
  0x74   : > { %v667_v31 = vmax.f32 %v631_v29, %v8732_v24  ;;  %622 = vst.msk [vmem:[#allocation2 + $0x30] sm:$0xff] %vm331_vm0, %v610_v43  ;;  %v437_v59 = vld [vmem:[#allocation2 + $0x40] sm:$0x7f]  ;;  %v438_v62 = vld [vmem:[#allocation2 + $0x48] sm:$0x7f]  ;;  %9811 = vmatprep.subr.bf16.mxu0 %v10494_v48  ;;  %9832 = vmatprep.subr.bf16.mxu1 %v10494_v48  ;;  %v1053_v13 = vand.u32 4294901760, %v1052_v10  ;;  %v10839_v28 = vpack.c.bf16 %v1052_v10, %v1045_v9 }
  0x75   : > { %678 = vst.msk [vmem:[#allocation2 + $0x8] sm:$0x7f] %vm412_vm1, %v666_v21  ;;  %v485_v61 = vmax.f32 %v437_v59, %v8698_v53  ;;  %v486_v2 = vmax.f32 %v438_v62, %v8699_v57  ;;  %v1047_v15 = vsub.f32 %v1045_v9, %v1046_v12  ;;  %v8713_v17 = vld [vmem:[%s10627_s4 + $0x140] ss:$2 sm:$0xff]  ;;  %v8724_v29 = vld [vmem:[%s10627_s4 + $0x121] ss:$2 sm:$0xff] }
  0x76   : > { %679 = vst.msk [vmem:[#allocation2 + $0x10] sm:$0x7f] %vm412_vm1, %v667_v31  ;;  %v632_v45 = vld [vmem:[#allocation2 + $0x20] sm:$0x7f]  ;;  %v1054_v16 = vsub.f32 %v1052_v10, %v1053_v13  ;;  %v10860_v59 = vpack.c.bf16 %v1053_v13, %v1046_v12  ;;  %v8669_v12 = vld [vmem:[%s10627_s4 + $0x171] ss:$2 sm:$0xff] }
  0x77   : > { %v668_v47 = vmax.f32 %v632_v45, %v8733_v40  ;;  %501 = vst.msk [vmem:[#allocation2 + $0x40] sm:$0x7f] %vm412_vm1, %v485_v61  ;;  %502 = vst.msk [vmem:[#allocation2 + $0x48] sm:$0x7f] %vm412_vm1, %v486_v2  ;;  %v1048_v20 = vand.u32 4294901760, %v1047_v15 }
  0x78   : > { %v633_v58 = vld [vmem:[#allocation2 + $0x28] sm:$0x7f]  ;;  %v1055_v21 = vand.u32 4294901760, %v1054_v16 }
  0x79   : > { %680 = vst.msk [vmem:[#allocation2 + $0x20] sm:$0x7f] %vm412_vm1, %v668_v47  ;;  %v669_v60 = vmax.f32 %v633_v58, %v8734_v52  ;;  %v8620_v30 = vld [vmem:[%s10627_s4 + $0x140] ss:$2 sm:$0xff]  ;;  %v8636_v31 = vld [vmem:[%s10627_s4 + $0x141] ss:$2 sm:$0xff] }
  0x7a   : > { %v10743_v34 = vld [vmem:[#allocation2] sm:$0xff]  ;;  %v10827_v25 = vpack.c.bf16 %v1055_v21, %v1048_v20  ;;  %v229_v33 = vmax.f32 %v8620_v30, %v8636_v31  ;;  %v8655_v31 = vld [vmem:[%s10627_s4 + $0x1b0] ss:$2 sm:$0xff] }
  0x7b   : > { %721 = vrot.lane.b32.xlu0 %v10743_v34, %s10492_s18  ;;  %850 = vrot.lane.b32.xlu1 %v10743_v34, %s10493_s27  ;;  %681 = vst.msk [vmem:[#allocation2 + $0x28] sm:$0x7f] %vm412_vm1, %v669_v60  ;;  %v634_v5 = vld [vmem:[#allocation2 + $0x30] sm:$0x7f]  ;;  %v8725_v32 = vld [vmem:[%s10627_s4 + $0x141] ss:$2 sm:$0xff] }
  0x7c   : > { %v10755_v42 = vld [vmem:[#allocation2 + $0x8] sm:$0xff]  ;;  %v670_v8 = vmax.f32 %v634_v5, %v8735_v63  ;;  %v277_v39 = vmax.f32 %v229_v33, %v8652_v36  ;;  %v8700_v63 = vld [vmem:[%s10627_s4 + $0x152] ss:$2 sm:$0x7f]  ;;  %v8671_v36 = vld [vmem:[%s10627_s4 + $0x1b1] ss:$2 sm:$0xff] }
  0x7d   : > { %v10774_v54 = vld [vmem:[#allocation2 + $0x10] sm:$0xff]  ;;  %v8736_v44 = vld [vmem:[%s10627_s4 + $0x122] ss:$2 sm:$0x7f]  ;;  %v8637_v3 = vld [vmem:[%s10627_s4 + $0x161] ss:$2 sm:$0xff] }
  0x7e   : > { %682 = vst.msk [vmem:[#allocation2 + $0x30] sm:$0x7f] %vm412_vm1, %v670_v8  ;;  %v515_v19 = vld [vmem:[#allocation2 + $0x40] sm:$0xff]  ;;  %v516_v23 = vld [vmem:[#allocation2 + $0x48] sm:$0xff]  ;;  %v325_v43 = vmax.f32 %v277_v39, %v8668_v41 }
  0x7f   : > { %723 = vrot.lane.b32.xlu0 %v10755_v42, %s10492_s18  ;;  %852 = vrot.lane.b32.xlu1 %v10755_v42, %s10493_s27  ;;  %v551_v22 = vmax.f32 %v515_v19, %v8712_v14  ;;  %v552_v24 = vmax.f32 %v516_v23, %v8713_v17  ;;  %v8737_v45 = vld [vmem:[%s10627_s4 + $0x142] ss:$2 sm:$0x7f]  ;;  %v8726_v15 = vld [vmem:[%s10627_s4 + $0x161] ss:$2 sm:$0xff] }
  0x80   : > { %v10812_v11 = vld [vmem:[#allocation2 + $0x20] sm:$0xff]  ;;  %342 = vst.msk [vmem:[#allocation2 + $0x50] sm:$0xff] %vm331_vm0, %v325_v43  ;;  %v8654_v23 = vld [vmem:[%s10627_s4 + $0x190] ss:$2 sm:$0xff] }
  0x81   : > { %563 = vst.msk [vmem:[#allocation2 + $0x40] sm:$0xff] %vm331_vm0, %v551_v22  ;;  %564 = vst.msk [vmem:[#allocation2 + $0x48] sm:$0xff] %vm331_vm0, %v552_v24  ;;  %v8684_v57 = vld [vmem:[%s10627_s4 + $0x142] ss:$2 sm:$0x7f] }
  0x82   : > { %v10821_v18 = vld [vmem:[#allocation2 + $0x28] sm:$0xff] }
  0x83   : > { %725 = vrot.lane.b32.xlu0 %v10774_v54, %s10492_s18  ;;  %727 = vrot.lane.b32.xlu1 %v10761_v46, %s10492_s18  ;;  %v8621_v2 = vld [vmem:[%s10627_s4 + $0x160] ss:$2 sm:$0xff]  ;;  %v8638_v22 = vld [vmem:[%s10627_s4 + $0x181] ss:$2 sm:$0xff] }
  0x84   : > { %v230_v5 = vmax.f32 %v8621_v2, %v8637_v3  ;;  %v8714_v8 = vld [vmem:[%s10627_s4 + $0x160] ss:$2 sm:$0xff]  ;;  %v8639_v30 = vld [vmem:[%s10627_s4 + $0x1a1] ss:$2 sm:$0xff] }
  0x85   : > { %v10830_v26 = vld [vmem:[#allocation2 + $0x30] sm:$0xff]  ;;  %v8622_v16 = vld [vmem:[%s10627_s4 + $0x180] ss:$2 sm:$0xff] }
  0x86   : > { %v278_v9 = vmax.f32 %v230_v5, %v8653_v6  ;;  %v8685_v20 = vld [vmem:[%s10627_s4 + $0x162] ss:$2 sm:$0x7f]  ;;  %v8703_v2 = vld [vmem:[%s10627_s4 + $0x1b2] ss:$2 sm:$0x7f] }
  0x87   : > { %854 = vrot.lane.b32.xlu0 %v10774_v54, %s10493_s27  ;;  %856 = vrot.lane.b32.xlu1 %v10761_v46, %s10493_s27  ;;  %v358_v55 = vld [vmem:[#allocation2 + $0x50] sm:$0x7f]  ;;  %v8623_v24 = vld [vmem:[%s10627_s4 + $0x1a0] ss:$2 sm:$0xff] }
  0x88   : > { %v575_v35 = vld [vmem:[#allocation2 + $0x40] sm:$0xff]  ;;  %v576_v38 = vld [vmem:[#allocation2 + $0x48] sm:$0xff]  ;;  %v406_v58 = vmax.f32 %v358_v55, %v8684_v57  ;;  %v326_v13 = vmax.f32 %v278_v9, %v8669_v12  ;;  %v232_v33 = vmax.f32 %v8623_v24, %v8639_v30 }
  0x89   : > { %v611_v37 = vmax.f32 %v575_v35, %v8724_v29  ;;  %v612_v40 = vmax.f32 %v576_v38, %v8725_v32  ;;  %v231_v29 = vmax.f32 %v8622_v16, %v8638_v22  ;;  %v8670_v32 = vld [vmem:[%s10627_s4 + $0x191] ss:$2 sm:$0xff]  ;;  %v8738_v41 = vld [vmem:[%s10627_s4 + $0x162] ss:$2 sm:$0x7f] }
  0x8a   : > { %423 = vst.msk [vmem:[#allocation2 + $0x50] sm:$0x7f] %vm412_vm1, %v406_v58  ;;  %v8716_v9 = vld [vmem:[%s10627_s4 + $0x1c0] ss:$2 sm:$0xff]  ;;  %v8728_v22 = vld [vmem:[%s10627_s4 + $0x1c1] ss:$2 sm:$0xff] }
  0x8b   : > { %729 = vrot.lane.b32.xlu0 %v10812_v11, %s10492_s18  ;;  %731 = vrot.lane.b32.xlu1 %v10821_v18, %s10492_s18  ;;  %623 = vst.msk [vmem:[#allocation2 + $0x40] sm:$0xff] %vm331_vm0, %v611_v37  ;;  %624 = vst.msk [vmem:[#allocation2 + $0x48] sm:$0xff] %vm331_vm0, %v612_v40  ;;  %v279_v35 = vmax.f32 %v231_v29, %v8654_v23  ;;  %v280_v37 = vmax.f32 %v232_v33, %v8655_v31  ;;  %v8656_v29 = vld [vmem:[%s10627_s4 + $0x1d0] ss:$2 sm:$0xff] }
  0x8c   : > { %343 = vst.msk [vmem:[#allocation2 + $0x58] sm:$0xff] %vm331_vm0, %v326_v13 }
  0x8d   : > { %v327_v38 = vmax.f32 %v279_v35, %v8670_v32  ;;  %v328_v39 = vmax.f32 %v280_v37, %v8671_v36  ;;  %v8672_v37 = vld [vmem:[%s10627_s4 + $0x1d1] ss:$2 sm:$0xff] }
  0x8f   : > { %858 = vrot.lane.b32.xlu0 %v10812_v11, %s10493_s27  ;;  %860 = vrot.lane.b32.xlu1 %v10821_v18, %s10493_s27  ;;  %344 = vst.msk [vmem:[#allocation2 + $0x60] sm:$0xff] %vm331_vm0, %v327_v38  ;;  %345 = vst.msk [vmem:[#allocation2 + $0x68] sm:$0xff] %vm331_vm0, %v328_v39 }
  0x91   : > { %v439_v62 = vld [vmem:[#allocation2 + $0x50] sm:$0x7f] }
  0x92   : > { %v635_v47 = vld [vmem:[#allocation2 + $0x40] sm:$0x7f]  ;;  %v636_v52 = vld [vmem:[#allocation2 + $0x48] sm:$0x7f]  ;;  %v487_v0 = vmax.f32 %v439_v62, %v8700_v63 }
  0x93   : > { %733 = vrot.lane.b32.xlu0 %v10830_v26, %s10492_s18  ;;  %735 = vrot.lane.b32.xlu1 %v10837_v27, %s10492_s18  ;;  %v671_v50 = vmax.f32 %v635_v47, %v8736_v44  ;;  %v672_v53 = vmax.f32 %v636_v52, %v8737_v45  ;;  %v359_v19 = vld [vmem:[#allocation2 + $0x58] sm:$0x7f]  ;;  %v8687_v52 = vld [vmem:[%s10627_s4 + $0x1a2] ss:$2 sm:$0x7f] }
  0x94   : > { %503 = vst.msk [vmem:[#allocation2 + $0x50] sm:$0x7f] %vm412_vm1, %v487_v0  ;;  %v407_v21 = vmax.f32 %v359_v19, %v8685_v20  ;;  %v8701_v45 = vld [vmem:[%s10627_s4 + $0x172] ss:$2 sm:$0x7f] }
  0x95   : > { %683 = vst.msk [vmem:[#allocation2 + $0x40] sm:$0x7f] %vm412_vm1, %v671_v50  ;;  %684 = vst.msk [vmem:[#allocation2 + $0x48] sm:$0x7f] %vm412_vm1, %v672_v53  ;;  %v8624_v19 = vld [vmem:[%s10627_s4 + $0x1c0] ss:$2 sm:$0xff] }
  0x96   : > { %424 = vst.msk [vmem:[#allocation2 + $0x58] sm:$0x7f] %vm412_vm1, %v407_v21  ;;  %v8686_v50 = vld [vmem:[%s10627_s4 + $0x182] ss:$2 sm:$0x7f] }
  0x97   : > { %862 = vrot.lane.b32.xlu0 %v10830_v26, %s10493_s27  ;;  %864 = vrot.lane.b32.xlu1 %v10837_v27, %s10493_s27  ;;  %v360_v53 = vld [vmem:[#allocation2 + $0x60] sm:$0x7f]  ;;  %v361_v57 = vld [vmem:[#allocation2 + $0x68] sm:$0x7f] }
  0x98   : > { %v408_v55 = vmax.f32 %v360_v53, %v8686_v50  ;;  %v409_v58 = vmax.f32 %v361_v57, %v8687_v52  ;;  %v8702_v0 = vld [vmem:[%s10627_s4 + $0x192] ss:$2 sm:$0x7f]  ;;  %v8640_v20 = vld [vmem:[%s10627_s4 + $0x1c1] ss:$2 sm:$0xff] }
  0x99   : > { %v233_v23 = vmax.f32 %v8624_v19, %v8640_v20 }
  0x9a   : > { %425 = vst.msk [vmem:[#allocation2 + $0x60] sm:$0x7f] %vm412_vm1, %v408_v55  ;;  %426 = vst.msk [vmem:[#allocation2 + $0x68] sm:$0x7f] %vm412_vm1, %v409_v58 }
  0x9b   : > { %v517_v7 = vld [vmem:[#allocation2 + $0x50] sm:$0xff]  ;;  %v281_v32 = vmax.f32 %v233_v23, %v8656_v29 }
  0x9c   : > { %v10864_v60 = vld [vmem:[#allocation2 + $0x40] sm:$0xff]  ;;  %v10868_v61 = vld [vmem:[#allocation2 + $0x48] sm:$0xff]  ;;  %v553_v10 = vmax.f32 %v517_v7, %v8714_v8 }
  0x9d   : > { %737 = vrot.lane.b32.xlu0 %v10864_v60, %s10492_s18  ;;  %739 = vrot.lane.b32.xlu1 %v10868_v61, %s10492_s18  ;;  %v440_v44 = vld [vmem:[#allocation2 + $0x58] sm:$0x7f]  ;;  %v8715_v8 = vld [vmem:[%s10627_s4 + $0x1a0] ss:$2 sm:$0xff] }
  0x9e   : > { %565 = vst.msk [vmem:[#allocation2 + $0x50] sm:$0xff] %vm331_vm0, %v553_v10  ;;  %v488_v47 = vmax.f32 %v440_v44, %v8701_v45 }
  0xa0   : > { %504 = vst.msk [vmem:[#allocation2 + $0x58] sm:$0x7f] %vm412_vm1, %v488_v47  ;;  %v8740_v47 = vld [vmem:[%s10627_s4 + $0x1c2] ss:$2 sm:$0x7f] }
  0xa1   : > { %866 = vrot.lane.b32.xlu0 %v10864_v60, %s10493_s27  ;;  %868 = vrot.lane.b32.xlu1 %v10868_v61, %s10493_s27  ;;  %v441_v3 = vld [vmem:[#allocation2 + $0x60] sm:$0x7f]  ;;  %v442_v6 = vld [vmem:[#allocation2 + $0x68] sm:$0x7f] }
  0xa2   : > { %v489_v5 = vmax.f32 %v441_v3, %v8702_v0  ;;  %v490_v7 = vmax.f32 %v442_v6, %v8703_v2 }
  0xa4   : > { %505 = vst.msk [vmem:[#allocation2 + $0x60] sm:$0x7f] %vm412_vm1, %v489_v5  ;;  %506 = vst.msk [vmem:[#allocation2 + $0x68] sm:$0x7f] %vm412_vm1, %v490_v7 }
  0xa5   : > { %v577_v14 = vld [vmem:[#allocation2 + $0x50] sm:$0xff] }
  0xa6   : > { %v613_v17 = vmax.f32 %v577_v14, %v8726_v15 }
  0xa7   : > { %v10911_v63 = vld [vmem:[#allocation2 + $0x58] sm:$0xff] }
  0xa8   : > { %625 = vst.msk [vmem:[#allocation2 + $0x50] sm:$0xff] %vm331_vm0, %v613_v17  ;;  %743 = vrot.lane.b32.xlu1 %v10911_v63, %s10492_s18  ;;  %v8727_v17 = vld [vmem:[%s10627_s4 + $0x1a1] ss:$2 sm:$0xff] }
  0xab   : > { %v518_v10 = vld [vmem:[#allocation2 + $0x60] sm:$0xff]  ;;  %v519_v13 = vld [vmem:[#allocation2 + $0x68] sm:$0xff] }
  0xac   : > { %872 = vrot.lane.b32.xlu1 %v10911_v63, %s10493_s27  ;;  %v554_v12 = vmax.f32 %v518_v10, %v8715_v8  ;;  %v555_v14 = vmax.f32 %v519_v13, %v8716_v9 }
  0xae   : > { %566 = vst.msk [vmem:[#allocation2 + $0x60] sm:$0xff] %vm331_vm0, %v554_v12  ;;  %567 = vst.msk [vmem:[#allocation2 + $0x68] sm:$0xff] %vm331_vm0, %v555_v14 }
  0xaf   : > { %v637_v40 = vld [vmem:[#allocation2 + $0x50] sm:$0x7f] }
  0xb0   : > { %v673_v43 = vmax.f32 %v637_v40, %v8738_v41 }
  0xb2   : > { %685 = vst.msk [vmem:[#allocation2 + $0x50] sm:$0x7f] %vm412_vm1, %v673_v43 }
  0xb5   : > { %v578_v24 = vld [vmem:[#allocation2 + $0x60] sm:$0xff]  ;;  %v579_v31 = vld [vmem:[#allocation2 + $0x68] sm:$0xff] }
  0xb6   : > { %v614_v30 = vmax.f32 %v578_v24, %v8727_v17  ;;  %v615_v36 = vmax.f32 %v579_v31, %v8728_v22  ;;  %v8704_v24 = vld [vmem:[%s10627_s4 + $0x1d2] ss:$2 sm:$0x7f] }
  0xb8   : > { %626 = vst.msk [vmem:[#allocation2 + $0x60] sm:$0xff] %vm331_vm0, %v614_v30  ;;  %627 = vst.msk [vmem:[#allocation2 + $0x68] sm:$0xff] %vm331_vm0, %v615_v36 }
  0xb9   : > { %v10906_v62 = vld [vmem:[#allocation2 + $0x50] sm:$0xff] }
  0xba   : > { %741 = vrot.lane.b32.xlu0 %v10906_v62, %s10492_s18 }
  0xbe   : > { %870 = vrot.lane.b32.xlu0 %v10906_v62, %s10493_s27 }
  0xbf   : > { %v638_v52 = vld [vmem:[#allocation2 + $0x60] sm:$0x7f]  ;;  %v639_v55 = vld [vmem:[#allocation2 + $0x68] sm:$0x7f] }
  0xed   : > { %v722_v15 = vpop.permute.xlu0 %721  ;;  %v851_v16 = vpop.permute.xlu1 %850 }
  0xee   : > { %v769_v21 = vmax.f32 %v10743_v34, %v722_v15  ;;  %v329_v34 = vmax.f32 %v281_v32, %v8672_v37 }
  0xf0   : > { %786 = vst.msk [vmem:[#allocation3] sm:$0xff] %vm785_vm7, %v769_v21 }
  0xf1   : > { %v724_v33 = vpop.permute.xlu0 %723  ;;  %v853_v35 = vpop.permute.xlu1 %852  ;;  %346 = vst.msk [vmem:[#allocation2 + $0x70] sm:$0xff] %vm331_vm0, %v329_v34 }
  0xf2   : > { %v770_v38 = vmax.f32 %v10755_v42, %v724_v33  ;;  %v8739_v42 = vld [vmem:[%s10627_s4 + $0x1a2] ss:$2 sm:$0x7f] }
  0xf3   : > { %v674_v53 = vmax.f32 %v638_v52, %v8739_v42  ;;  %v8641_v42 = vld [vmem:[%s10627_s4 + $0x1e1] ss:$2 sm:$0xff] }
  0xf4   : > { %787 = vst.msk [vmem:[#allocation3 + $0x8] sm:$0xff] %vm785_vm7, %v770_v38 }
  0xf5   : > { %v726_v39 = vpop.permute.xlu0 %725  ;;  %v728_v40 = vpop.permute.xlu1 %727  ;;  %686 = vst.msk [vmem:[#allocation2 + $0x60] sm:$0x7f] %vm412_vm1, %v674_v53 }
  0xf6   : > { %v771_v41 = vmax.f32 %v10774_v54, %v726_v39  ;;  %v772_v43 = vmax.f32 %v10761_v46, %v728_v40  ;;  %v675_v54 = vmax.f32 %v639_v55, %v8740_v47  ;;  %v8688_v46 = vld [vmem:[%s10627_s4 + $0x1c2] ss:$2 sm:$0x7f] }
  0xf7   : > { %v802_v44 = vld [vmem:[#allocation3] sm:$0xff] }
  0xf8   : > { %v898_v45 = vmax.f32 %v802_v44, %v851_v16  ;;  %788 = vst.msk [vmem:[#allocation3 + $0x10] sm:$0xff] %vm785_vm7, %v771_v41  ;;  %789 = vst.msk [vmem:[#allocation3 + $0x18] sm:$0xff] %vm785_vm7, %v772_v43  ;;  %v362_v58 = vld [vmem:[#allocation2 + $0x70] sm:$0x7f]  ;;  %v8625_v44 = vld [vmem:[%s10627_s4 + $0x1e0] ss:$2 sm:$0xff] }
  0xf9   : > { %v855_v50 = vpop.permute.xlu0 %854  ;;  %v857_v2 = vpop.permute.xlu1 %856  ;;  %v410_v3 = vmax.f32 %v362_v58, %v8688_v46  ;;  %687 = vst.msk [vmem:[#allocation2 + $0x68] sm:$0x7f] %vm412_vm1, %v675_v54  ;;  %v234_v47 = vmax.f32 %v8625_v44, %v8641_v42  ;;  %v8717_v46 = vld [vmem:[%s10627_s4 + $0x1e0] ss:$2 sm:$0xff] }
  0xfa   : > { %915 = vst.msk [vmem:[#allocation3] sm:$0xff] %vm914_vm8, %v898_v45 }
  0xfb   : > { %v803_v57 = vld [vmem:[#allocation3 + $0x8] sm:$0xff]  ;;  %427 = vst.msk [vmem:[#allocation2 + $0x70] sm:$0x7f] %vm412_vm1, %v410_v3 }
  0xfc   : > { %v899_v0 = vmax.f32 %v803_v57, %v853_v35  ;;  %v10961_v17 = vld [vmem:[#allocation2 + $0x60] sm:$0xff] }
  0xfd   : > { %v730_v5 = vpop.permute.xlu0 %729  ;;  %v732_v12 = vpop.permute.xlu1 %731  ;;  %745 = vrot.lane.b32.xlu0 %v10961_v17, %s10492_s18 }
  0xfe   : > { %916 = vst.msk [vmem:[#allocation3 + $0x8] sm:$0xff] %vm914_vm8, %v899_v0  ;;  %v773_v6 = vmax.f32 %v10812_v11, %v730_v5  ;;  %v774_v14 = vmax.f32 %v10821_v18, %v732_v12  ;;  %v8673_v0 = vld [vmem:[%s10627_s4 + $0x1f1] ss:$2 sm:$0xff]  ;;  %v8689_v12 = vld [vmem:[%s10627_s4 + $0x1e2] ss:$2 sm:$0x7f] }
  0xff   : > { %v804_v7 = vld [vmem:[#allocation3 + $0x10] sm:$0xff]  ;;  %v805_v8 = vld [vmem:[#allocation3 + $0x18] sm:$0xff] }
 0x100   : > { %v900_v9 = vmax.f32 %v804_v7, %v855_v50  ;;  %v901_v10 = vmax.f32 %v805_v8, %v857_v2  ;;  %790 = vst.msk [vmem:[#allocation3 + $0x20] sm:$0xff] %vm785_vm7, %v773_v6  ;;  %791 = vst.msk [vmem:[#allocation3 + $0x28] sm:$0xff] %vm785_vm7, %v774_v14  ;;  %v10965_v20 = vld [vmem:[#allocation2 + $0x68] sm:$0xff]  ;;  %v8657_v50 = vld [vmem:[%s10627_s4 + $0x1f0] ss:$2 sm:$0xff] }
 0x101   : > { %v931_v13 = vld [vmem:[#allocation3] sm:$0xff]  ;;  %v859_v15 = vpop.permute.xlu0 %858  ;;  %v861_v19 = vpop.permute.xlu1 %860  ;;  %747 = vrot.lane.b32.xlu1 %v10965_v20, %s10492_s18  ;;  %874 = vrot.lane.b32.xlu0 %v10961_v17, %s10493_s27  ;;  %v282_v57 = vmax.f32 %v234_v47, %v8657_v50 }
 0x102   : > { %v960_v16 = vsel %vm785_vm7, %v931_v13, 0  ;;  %917 = vst.msk [vmem:[#allocation3 + $0x10] sm:$0xff] %vm914_vm8, %v900_v9  ;;  %918 = vst.msk [vmem:[#allocation3 + $0x18] sm:$0xff] %vm914_vm8, %v901_v10  ;;  %v443_v23 = vld [vmem:[#allocation2 + $0x70] sm:$0x7f] }
 0x103   : > { %v10958_v11 = vand.u32 4294901760, %v960_v16  ;;  %v491_v31 = vmax.f32 %v443_v23, %v8704_v24  ;;  %v330_v3 = vmax.f32 %v282_v57, %v8673_v0  ;;  %v8729_v7 = vld [vmem:[%s10627_s4 + $0x1e1] ss:$2 sm:$0xff] }
 0x105   : > { %v10968_v18 = vsub.f32 %v960_v16, %v10958_v11  ;;  %v932_v21 = vld [vmem:[#allocation3 + $0x8] sm:$0xff]  ;;  %v734_v22 = vpop.permute.xlu0 %733  ;;  %v736_v37 = vpop.permute.xlu1 %735  ;;  %507 = vst.msk [vmem:[#allocation2 + $0x70] sm:$0x7f] %vm412_vm1, %v491_v31  ;;  %876 = vrot.lane.b32.xlu1 %v10965_v20, %s10493_s27 }
 0x106   : > { %v1426_v29 = vsel %vm785_vm7, %v932_v21, 0  ;;  %v775_v30 = vmax.f32 %v10830_v26, %v734_v22  ;;  %v776_v34 = vmax.f32 %v10837_v27, %v736_v37  ;;  %347 = vst.msk [vmem:[#allocation2 + $0x78] sm:$0xff] %vm331_vm0, %v330_v3 }
 0x107   : > { %v1035_v32 = vand.u32 4294901760, %v10968_v18  ;;  %v10976_v33 = vand.u32 4294901760, %v1426_v29  ;;  %v806_v35 = vld [vmem:[#allocation3 + $0x20] sm:$0xff]  ;;  %v807_v39 = vld [vmem:[#allocation3 + $0x28] sm:$0xff] }
 0x108   : > { %v902_v36 = vmax.f32 %v806_v35, %v859_v15  ;;  %792 = vst.msk [vmem:[#allocation3 + $0x30] sm:$0xff] %vm785_vm7, %v775_v30  ;;  %793 = vst.msk [vmem:[#allocation3 + $0x38] sm:$0xff] %vm785_vm7, %v776_v34  ;;  %v903_v43 = vmax.f32 %v807_v39, %v861_v19 }
 0x109   : > { %v1036_v26 = vsub.f32 %v10968_v18, %v1035_v32  ;;  %v10986_v38 = vsub.f32 %v1426_v29, %v10976_v33  ;;  %v863_v45 = vpop.permute.xlu0 %862  ;;  %v865_v58 = vpop.permute.xlu1 %864  ;;  %v933_v15 = vld [vmem:[#allocation3 + $0x10] sm:$0xff]  ;;  %v934_v29 = vld [vmem:[#allocation3 + $0x18] sm:$0xff] }
 0x10a   : > { %919 = vst.msk [vmem:[#allocation3 + $0x20] sm:$0xff] %vm914_vm8, %v902_v36  ;;  %920 = vst.msk [vmem:[#allocation3 + $0x28] sm:$0xff] %vm914_vm8, %v903_v43  ;;  %v1888_v22 = vsel %vm785_vm7, %v933_v15, 0 }
 0x10b   : > { %v1037_v40 = vand.u32 4294901760, %v1036_v26  ;;  %v1497_v41 = vand.u32 4294901760, %v10986_v38  ;;  %v11052_v24 = vand.u32 4294901760, %v1888_v22 }
 0x10c   : > { %v520_v55 = vld [vmem:[#allocation2 + $0x70] sm:$0xff] }
 0x10d   : > { %9140 = vmatmul.mubr.f32.vlgmr.msra.gmra.mrb[0].mxu0 %v1037_v40  ;;  %v1498_v27 = vsub.f32 %v10986_v38, %v1497_v41  ;;  %v556_v2 = vmax.f32 %v520_v55, %v8717_v46  ;;  %v363_v9 = vld [vmem:[#allocation2 + $0x78] sm:$0x7f]  ;;  %v11064_v26 = vsub.f32 %v1888_v22, %v11052_v24 }
 0x10e   : > { %9813 = vmatpush3.bf16.msra.mxu0 %v10827_v25  ;;  %9146 = vmatprep.mubr.msk.f32.mxu0 %vm10495_vm2, %v10496_v51  ;;  %v411_v13 = vmax.f32 %v363_v9, %v8689_v12 }
 0x10f   : > { %v1499_v52 = vand.u32 4294901760, %v1498_v27  ;;  %9814 = vmatprep.subr.bf16.mxu0 %v10494_v48  ;;  %v808_v53 = vld [vmem:[#allocation3 + $0x30] sm:$0xff]  ;;  %v809_v5 = vld [vmem:[#allocation3 + $0x38] sm:$0xff]  ;;  %568 = vst.msk [vmem:[#allocation2 + $0x70] sm:$0xff] %vm331_vm0, %v556_v2  ;;  %v738_v14 = vpop.permute.xlu0 %737  ;;  %v740_v19 = vpop.permute.xlu1 %739 }
 0x110   : > { %v904_v54 = vmax.f32 %v808_v53, %v863_v45  ;;  %v905_v6 = vmax.f32 %v809_v5, %v865_v58  ;;  %428 = vst.msk [vmem:[#allocation2 + $0x78] sm:$0x7f] %vm412_vm1, %v411_v13  ;;  %v777_v16 = vmax.f32 %v10864_v60, %v738_v14  ;;  %v778_v21 = vmax.f32 %v10868_v61, %v740_v19  ;;  %v8741_v60 = vld [vmem:[%s10627_s4 + $0x1e2] ss:$2 sm:$0x7f] }
 0x111   : > { %9182 = vmatmul.mubr.f32.vlgmr.msra.gmra.mrb[0].mxu1 %v1499_v52  ;;  %v8705_v61 = vld [vmem:[%s10627_s4 + $0x1f2] ss:$2 sm:$0x7f]  ;;  %v935_v57 = vld [vmem:[#allocation3 + $0x20] sm:$0xff] }
 0x112   : > { %9834 = vmatpush3.bf16.msra.mxu1 %v10827_v25  ;;  %9188 = vmatprep.mubr.msk.f32.mxu1 %vm10495_vm2, %v10496_v51  ;;  %921 = vst.msk [vmem:[#allocation3 + $0x30] sm:$0xff] %vm914_vm8, %v904_v54  ;;  %922 = vst.msk [vmem:[#allocation3 + $0x38] sm:$0xff] %vm914_vm8, %v905_v6  ;;  %v936_v54 = vld [vmem:[#allocation3 + $0x28] sm:$0xff] }
 0x113   : > { %9835 = vmatprep.subr.bf16.mxu1 %v10494_v48  ;;  %794 = vst.msk [vmem:[#allocation3 + $0x40] sm:$0xff] %vm785_vm7, %v777_v16  ;;  %795 = vst.msk [vmem:[#allocation3 + $0x48] sm:$0xff] %vm785_vm7, %v778_v21  ;;  %v867_v35 = vpop.permute.xlu0 %866  ;;  %v869_v37 = vpop.permute.xlu1 %868  ;;  %v3274_v5 = vsel %vm785_vm7, %v936_v54, 0 }
 0x115   : > { %9147 = vmatmul.mubr.f32.vlgmr.msra.gmra.mrb[0].mxu0 %v10958_v11 }
 0x116   : > { %9816 = vmatpush3.bf16.msra.mxu0 %v10839_v28  ;;  %9153 = vmatprep.mubr.msk.f32.mxu0 %vm10495_vm2, %v10496_v51  ;;  %v580_v8 = vld [vmem:[#allocation2 + $0x70] sm:$0xff] }
 0x117   : > { %9817 = vmatprep.subr.bf16.mxu0 %v10494_v48  ;;  %v616_v10 = vmax.f32 %v580_v8, %v8729_v7  ;;  %v444_v31 = vld [vmem:[#allocation2 + $0x78] sm:$0x7f]  ;;  %v11172_v8 = vand.u32 4294901760, %v3274_v5 }
 0x118   : > { %v492_v36 = vmax.f32 %v444_v31, %v8705_v61 }
 0x119   : > { %9189 = vmatmul.mubr.f32.vlgmr.msra.gmra.mrb[0].mxu1 %v10976_v33  ;;  %628 = vst.msk [vmem:[#allocation2 + $0x70] sm:$0xff] %vm331_vm0, %v616_v10  ;;  %v3344_v10 = vsub.f32 %v3274_v5, %v11172_v8  ;;  %v937_v21 = vld [vmem:[#allocation3 + $0x30] sm:$0xff]  ;;  %vm8398_vm0 = vcmask 64512  }
 0x11a   : > { %9837 = vmatpush3.bf16.msra.mxu1 %v10839_v28  ;;  %9195 = vmatprep.mubr.msk.f32.mxu1 %vm10495_vm2, %v10496_v51  ;;  %508 = vst.msk [vmem:[#allocation2 + $0x78] sm:$0x7f] %vm412_vm1, %v492_v36  ;;  %v811_v39 = vld [vmem:[#allocation3 + $0x48] sm:$0xff]  ;;  %v744_v53 = vpop.permute.xlu1 %743  ;;  %v3736_v61 = vsel %vm785_vm7, %v937_v21, 0 }
 0x11b   : > { %9838 = vmatprep.subr.bf16.mxu1 %v10494_v48  ;;  %v907_v40 = vmax.f32 %v811_v39, %v869_v37  ;;  %v780_v55 = vmax.f32 %v10911_v63, %v744_v53  ;;  %v3345_v13 = vand.u32 4294901760, %v3344_v10 }
 0x11d   : > { %9154 = vmatmul.mubr.f32.vlgmr.msra.gmra.mrb[0].mxu0 %v10968_v18  ;;  %v2350_v18 = vsel %vm785_vm7, %v934_v29, 0  ;;  %924 = vst.msk [vmem:[#allocation3 + $0x48] sm:$0xff] %vm914_vm8, %v907_v40  ;;  %v3346_v15 = vsub.f32 %v3344_v10, %v3345_v13 }
 0x11e   : > { %9820 = vmatpush3.bf16.msk.msra.mxu0 %vm10791_vm6, %v10796_v4  ;;  %9160 = vmatprep.mubr.msk.f32.mxu0 %vm10495_vm2, %v10496_v51  ;;  %v11070_v43 = vand.u32 4294901760, %v2350_v18  ;;  %797 = vst.msk [vmem:[#allocation3 + $0x58] sm:$0xff] %vm785_vm7, %v780_v55  ;;  %v873_v0 = vpop.permute.xlu1 %872 }
 0x11f   : > { %9821 = vmatprep.subr.bf16.mxu0 %v10494_v48  ;;  %v3347_v16 = vand.u32 4294901760, %v3346_v15 }
 0x120   : > { %v640_v23 = vld [vmem:[#allocation2 + $0x70] sm:$0x7f]  ;;  %v11085_v44 = vsub.f32 %v2350_v18, %v11070_v43 }
 0x121   : > { %9196 = vmatmul.mubr.f32.vlgmr.msra.gmra.mrb[0].mxu1 %v10986_v38  ;;  %v676_v30 = vmax.f32 %v640_v23, %v8741_v60  ;;  %v1959_v38 = vand.u32 4294901760, %v11064_v26  ;;  %v11089_v42 = vld [vmem:[#allocation2 + $0x78] sm:$0xff] }
 0x122   : > { %9841 = vmatpush3.bf16.msk.msra.mxu1 %vm10791_vm6, %v10796_v4  ;;  %9202 = vmatprep.mubr.msk.f32.mxu1 %vm10495_vm2, %v10496_v51  ;;  %v2421_v45 = vand.u32 4294901760, %v11085_v44 }
 0x123   : > { %9842 = vmatprep.subr.bf16.mxu1 %v10494_v48  ;;  %688 = vst.msk [vmem:[#allocation2 + $0x70] sm:$0x7f] %vm412_vm1, %v676_v30  ;;  %751 = vrot.lane.b32.xlu1 %v11089_v42, %s10492_s18  ;;  %v1960_v27 = vsub.f32 %v11064_v26, %v1959_v38 }
 0x124   : > { %v2422_v50 = vsub.f32 %v11085_v44, %v2421_v45 }
 0x125   : > { %9161 = vmatmul.mubr.f32.vlgmr.msra.gmra.mrb[0].mxu0 %v1035_v32  ;;  %v810_v32 = vld [vmem:[#allocation3 + $0x40] sm:$0xff]  ;;  %v1961_v47 = vand.u32 4294901760, %v1960_v27  ;;  %v813_v3 = vld [vmem:[#allocation3 + $0x58] sm:$0xff] }
 0x126   : > { %9823 = vmatpush3.bf16.msra.mxu0 %v10860_v59  ;;  %9167 = vmatprep.mubr.msk.f32.mxu0 %vm10495_vm2, %v10496_v51  ;;  %v906_v34 = vmax.f32 %v810_v32, %v867_v35  ;;  %v909_v6 = vmax.f32 %v813_v3, %v873_v0 }
 0x127   : > { %9824 = vmatprep.subr.bf16.mxu0 %v10494_v48  ;;  %880 = vrot.lane.b32.xlu1 %v11089_v42, %s10493_s27 }
 0x128   : > { %923 = vst.msk [vmem:[#allocation3 + $0x40] sm:$0xff] %vm914_vm8, %v906_v34  ;;  %926 = vst.msk [vmem:[#allocation3 + $0x58] sm:$0xff] %vm914_vm8, %v909_v6 }
 0x129   : > { %9203 = vmatmul.mubr.f32.vlgmr.msra.gmra.mrb[0].mxu1 %v1497_v41 }
 0x12a   : > { %9844 = vmatpush3.bf16.msra.mxu1 %v10860_v59  ;;  %9209 = vmatprep.mubr.msk.f32.mxu1 %vm10495_vm2, %v10496_v51  ;;  %v11081_v41 = vld [vmem:[#allocation2 + $0x70] sm:$0xff] }
 0x12b   : > { %9845 = vmatprep.subr.bf16.mxu1 %v10494_v48  ;;  %749 = vrot.lane.b32.xlu0 %v11081_v41, %s10492_s18 }
 0x12d   : > { %9168 = vmatmul.mubr.f32.vlgmr.msra.gmra.mrb[0].mxu0 %v10958_v11 }
 0x12e   : > { %9827 = vmatpush3.bf16.msk.msra.mxu0 %vm10791_vm6, %v10796_v4  ;;  %9174 = vmatprep.mubr.msk.f32.mxu0 %vm10495_vm2, %v10496_v51 }
 0x12f   : > { %9849 = vmatprep.subr.bf16.mxu0 %v10494_v48  ;;  %878 = vrot.lane.b32.xlu0 %v11081_v41, %s10493_s27 }
 0x131   : > { %9210 = vmatmul.mubr.f32.vlgmr.msra.gmra.mrb[0].mxu1 %v10976_v33 }
 0x132   : > { %9848 = vmatpush3.bf16.msk.msra.mxu1 %vm10791_vm6, %v10796_v4  ;;  %9216 = vmatprep.mubr.msk.f32.mxu1 %vm10495_vm2, %v10496_v51 }
 0x133   : > { %9870 = vmatprep.subr.bf16.mxu1 %v10494_v48 }
 0x135   : > { %9175 = vmatmul.mubr.f32.vlgmr.msra.gmra.mrb[0].mxu0 %v10958_v11  ;;  %v2423_v11 = vand.u32 4294901760, %v2422_v50  ;;  %v939_v50 = vld [vmem:[#allocation3 + $0x40] sm:$0xff] }
 0x136   : > { %9852 = vmatpush3.bf16.msk.msra.mxu0 %vm10791_vm6, %v10796_v4  ;;  %9223 = vmatprep.mubr.msk.f32.mxu0 %vm10495_vm2, %v10496_v51 }
 0x137   : > { %9853 = vmatprep.subr.bf16.mxu0 %v10494_v48 }
 0x139   : > { %9217 = vmatmul.mubr.f32.vlgmr.msra.gmra.mrb[0].mxu1 %v10976_v33  ;;  %9224 = vmatmul.mubr.f32.vlgmr.msra.gmra.mrb[2].mxu0 %v1961_v47  ;;  %v742_v33 = vpop.permute.xlu0 %741 }
 0x13a   : > { %9873 = vmatpush3.bf16.msk.msra.mxu1 %vm10791_vm6, %v10796_v4  ;;  %9855 = vmatpush3.bf16.msra.mxu0 %v10827_v25  ;;  %v779_v52 = vmax.f32 %v10906_v62, %v742_v33  ;;  %v2812_v62 = vsel %vm785_vm7, %v935_v57, 0 }
 0x13b   : > { %9265 = vmatprep.mubr.msk.f32.mxu1 %vm10495_vm2, %v10496_v51  ;;  %9874 = vmatprep.subr.bf16.mxu1 %v10494_v48  ;;  %v11158_v63 = vand.u32 4294901760, %v2812_v62 }
 0x13c   : > { %9230 = vmatprep.mubr.msk.f32.mxu0 %vm10495_vm2, %v10496_v51  ;;  %9856 = vmatprep.subr.bf16.mxu0 %v10494_v48  ;;  %796 = vst.msk [vmem:[#allocation3 + $0x50] sm:$0xff] %vm785_vm7, %v779_v52 }
 0x13d   : > { %9266 = vmatmul.mubr.f32.vlgmr.msra.gmra.mrb[2].mxu1 %v2423_v11  ;;  %v871_v46 = vpop.permute.xlu0 %870  ;;  %v2882_v7 = vsub.f32 %v2812_v62, %v11158_v63 }
 0x13e   : > { %9876 = vmatpush3.bf16.msra.mxu1 %v10827_v25  ;;  %9272 = vmatprep.mubr.msk.f32.mxu1 %vm10495_vm2, %v10496_v51 }
 0x13f   : > { %9877 = vmatprep.subr.bf16.mxu1 %v10494_v48  ;;  %v2883_v9 = vand.u32 4294901760, %v2882_v7 }
 0x141   : > { %9231 = vmatmul.mubr.f32.vlgmr.msra.gmra.mrb[2].mxu0 %v11052_v24  ;;  %v2884_v12 = vsub.f32 %v2882_v7, %v2883_v9 }
 0x142   : > { %9858 = vmatpush3.bf16.msra.mxu0 %v10839_v28  ;;  %9237 = vmatprep.mubr.msk.f32.mxu0 %vm10495_vm2, %v10496_v51 }
 0x143   : > { %9859 = vmatprep.subr.bf16.mxu0 %v10494_v48  ;;  %v812_v58 = vld [vmem:[#allocation3 + $0x50] sm:$0xff]  ;;  %v2885_v14 = vand.u32 4294901760, %v2884_v12 }
 0x144   : > { %v908_v2 = vmax.f32 %v812_v58, %v871_v46 }
 0x145   : > { %9273 = vmatmul.mubr.f32.vlgmr.msra.gmra.mrb[2].mxu1 %v11070_v43 }
 0x146   : > { %9879 = vmatpush3.bf16.msra.mxu1 %v10839_v28  ;;  %9279 = vmatprep.mubr.msk.f32.mxu1 %vm10495_vm2, %v10496_v51  ;;  %925 = vst.msk [vmem:[#allocation3 + $0x50] sm:$0xff] %vm914_vm8, %v908_v2 }
 0x147   : > { %9880 = vmatprep.subr.bf16.mxu1 %v10494_v48 }
 0x149   : > { %9238 = vmatmul.mubr.f32.vlgmr.msra.gmra.mrb[2].mxu0 %v11064_v26 }
 0x14a   : > { %9862 = vmatpush3.bf16.msk.msra.mxu0 %vm10791_vm6, %v10796_v4  ;;  %9244 = vmatprep.mubr.msk.f32.mxu0 %vm10495_vm2, %v10496_v51 }
 0x14b   : > { %9863 = vmatprep.subr.bf16.mxu0 %v10494_v48 }
 0x14d   : > { %9280 = vmatmul.mubr.f32.vlgmr.msra.gmra.mrb[2].mxu1 %v11085_v44 }
 0x14e   : > { %9883 = vmatpush3.bf16.msk.msra.mxu1 %vm10791_vm6, %v10796_v4  ;;  %9286 = vmatprep.mubr.msk.f32.mxu1 %vm10495_vm2, %v10496_v51 }
 0x14f   : > { %9884 = vmatprep.subr.bf16.mxu1 %v10494_v48 }
 0x151   : > { %9245 = vmatmul.mubr.f32.vlgmr.msra.gmra.mrb[2].mxu0 %v1959_v38 }
 0x152   : > { %9865 = vmatpush3.bf16.msra.mxu0 %v10860_v59  ;;  %9251 = vmatprep.mubr.msk.f32.mxu0 %vm10495_vm2, %v10496_v51 }
 0x153   : > { %9866 = vmatprep.subr.bf16.mxu0 %v10494_v48 }
 0x155   : > { %9287 = vmatmul.mubr.f32.vlgmr.msra.gmra.mrb[2].mxu1 %v2421_v45 }
 0x156   : > { %9886 = vmatpush3.bf16.msra.mxu1 %v10860_v59  ;;  %9293 = vmatprep.mubr.msk.f32.mxu1 %vm10495_vm2, %v10496_v51 }
 0x157   : > { %9887 = vmatprep.subr.bf16.mxu1 %v10494_v48 }
 0x159   : > { %9252 = vmatmul.mubr.f32.vlgmr.msra.gmra.mrb[2].mxu0 %v11052_v24 }
 0x15a   : > { %9869 = vmatpush3.bf16.msk.msra.mxu0 %vm10791_vm6, %v10796_v4  ;;  %9258 = vmatprep.mubr.msk.f32.mxu0 %vm10495_vm2, %v10496_v51 }
 0x15b   : > { %9891 = vmatprep.subr.bf16.mxu0 %v10494_v48 }
 0x15d   : > { %9294 = vmatmul.mubr.f32.vlgmr.msra.gmra.mrb[2].mxu1 %v11070_v43 }
 0x15e   : > { %9890 = vmatpush3.bf16.msk.msra.mxu1 %vm10791_vm6, %v10796_v4  ;;  %9300 = vmatprep.mubr.msk.f32.mxu1 %vm10495_vm2, %v10496_v51 }
 0x15f   : > { %9912 = vmatprep.subr.bf16.mxu1 %v10494_v48 }
 0x161   : > { %9259 = vmatmul.mubr.f32.vlgmr.msra.gmra.mrb[2].mxu0 %v11052_v24 }
 0x162   : > { %9894 = vmatpush3.bf16.msk.msra.mxu0 %vm10791_vm6, %v10796_v4  ;;  %9307 = vmatprep.mubr.msk.f32.mxu0 %vm10495_vm2, %v10496_v51 }
 0x163   : > { %9895 = vmatprep.subr.bf16.mxu0 %v10494_v48 }
 0x165   : > { %9301 = vmatmul.mubr.f32.vlgmr.msra.gmra.mrb[2].mxu1 %v11070_v43  ;;  %9308 = vmatmul.mubr.f32.vlgmr.msra.gmra.mrb[4].mxu0 %v2885_v14 }
 0x166   : > { %9915 = vmatpush3.bf16.msk.msra.mxu1 %vm10791_vm6, %v10796_v4  ;;  %9897 = vmatpush3.bf16.msra.mxu0 %v10827_v25 }
 0x167   : > { %9349 = vmatprep.mubr.msk.f32.mxu1 %vm10495_vm2, %v10496_v51  ;;  %9916 = vmatprep.subr.bf16.mxu1 %v10494_v48 }
 0x168   : > { %9314 = vmatprep.mubr.msk.f32.mxu0 %vm10495_vm2, %v10496_v51  ;;  %9898 = vmatprep.subr.bf16.mxu0 %v10494_v48 }
 0x169   : > { %9350 = vmatmul.mubr.f32.vlgmr.msra.gmra.mrb[4].mxu1 %v3347_v16 }
 0x16a   : > { %9918 = vmatpush3.bf16.msra.mxu1 %v10827_v25  ;;  %9356 = vmatprep.mubr.msk.f32.mxu1 %vm10495_vm2, %v10496_v51 }
 0x16b   : > { %9919 = vmatprep.subr.bf16.mxu1 %v10494_v48 }
 0x16d   : > { %9315 = vmatmul.mubr.f32.vlgmr.msra.gmra.mrb[4].mxu0 %v11158_v63 }
 0x16e   : > { %9900 = vmatpush3.bf16.msra.mxu0 %v10839_v28  ;;  %9321 = vmatprep.mubr.msk.f32.mxu0 %vm10495_vm2, %v10496_v51 }
 0x16f   : > { %9901 = vmatprep.subr.bf16.mxu0 %v10494_v48  ;;  %v746_v19 = vpop.permute.xlu0 %745 }
 0x170   : > { %v781_v22 = vmax.f32 %v10961_v17, %v746_v19  ;;  %v11238_v17 = vand.u32 4294901760, %v3736_v61 }
 0x171   : > { %9357 = vmatmul.mubr.f32.vlgmr.msra.gmra.mrb[4].mxu1 %v11172_v8 }
 0x172   : > { %9921 = vmatpush3.bf16.msra.mxu1 %v10839_v28  ;;  %9363 = vmatprep.mubr.msk.f32.mxu1 %vm10495_vm2, %v10496_v51  ;;  %798 = vst.msk [vmem:[#allocation3 + $0x60] sm:$0xff] %vm785_vm7, %v781_v22  ;;  %v11246_v35 = vsub.f32 %v3736_v61, %v11238_v17 }
 0x173   : > { %9922 = vmatprep.subr.bf16.mxu1 %v10494_v48  ;;  %v748_v60 = vpop.permute.xlu1 %747  ;;  %v875_v24 = vpop.permute.xlu0 %874 }
 0x174   : > { %v782_v23 = vmax.f32 %v10965_v20, %v748_v60  ;;  %v938_v20 = vld [vmem:[#allocation3 + $0x38] sm:$0xff]  ;;  %v3807_v26 = vand.u32 4294901760, %v11246_v35 }
 0x175   : > { %9322 = vmatmul.mubr.f32.vlgmr.msra.gmra.mrb[4].mxu0 %v2882_v7  ;;  %v4198_v30 = vsel %vm785_vm7, %v938_v20, 0 }
 0x176   : > { %9904 = vmatpush3.bf16.msk.msra.mxu0 %vm10791_vm6, %v10796_v4  ;;  %9328 = vmatprep.mubr.msk.f32.mxu0 %vm10495_vm2, %v10496_v51  ;;  %799 = vst.msk [vmem:[#allocation3 + $0x68] sm:$0xff] %vm785_vm7, %v782_v23  ;;  %v11252_v32 = vand.u32 4294901760, %v4198_v30  ;;  %v3808_v39 = vsub.f32 %v11246_v35, %v3807_v26 }
 0x177   : > { %9905 = vmatprep.subr.bf16.mxu0 %v10494_v48  ;;  %v877_v29 = vpop.permute.xlu1 %876 }
 0x178   : > { %v4268_v34 = vsub.f32 %v4198_v30, %v11252_v32  ;;  %v3809_v43 = vand.u32 4294901760, %v3808_v39 }
 0x179   : > { %9364 = vmatmul.mubr.f32.vlgmr.msra.gmra.mrb[4].mxu1 %v3344_v10  ;;  %v814_v31 = vld [vmem:[#allocation3 + $0x60] sm:$0xff] }
 0x17a   : > { %9925 = vmatpush3.bf16.msk.msra.mxu1 %vm10791_vm6, %v10796_v4  ;;  %9370 = vmatprep.mubr.msk.f32.mxu1 %vm10495_vm2, %v10496_v51  ;;  %v910_v36 = vmax.f32 %v814_v31, %v875_v24  ;;  %v4269_v40 = vand.u32 4294901760, %v4268_v34  ;;  %v8355_v24 = vmul.u32 2, %v10765_v49 }
 0x17b   : > { %9926 = vmatprep.subr.bf16.mxu1 %v10494_v48 }
 0x17c   : > { %927 = vst.msk [vmem:[#allocation3 + $0x60] sm:$0xff] %vm914_vm8, %v910_v36  ;;  %v4270_v38 = vsub.f32 %v4268_v34, %v4269_v40  ;;  %vm11474_vm9 = vcmp.lt.s32.totalorder %v8355_v24, 0  ;;  %vm11478_vm10 = vcmp.ge.s32.totalorder %v8355_v24, 14 }
 0x17d   : > { %9329 = vmatmul.mubr.f32.vlgmr.msra.gmra.mrb[4].mxu0 %v2883_v9  ;;  %v815_v37 = vld [vmem:[#allocation3 + $0x68] sm:$0xff]  ;;  %v941_v9 = vld [vmem:[#allocation3 + $0x50] sm:$0xff]  ;;  %vm8358_vm13 = vmor %vm11474_vm9, %vm11478_vm10 }
 0x17e   : > { %9907 = vmatpush3.bf16.msra.mxu0 %v10860_v59  ;;  %9335 = vmatprep.mubr.msk.f32.mxu0 %vm10495_vm2, %v10496_v51  ;;  %v911_v18 = vmax.f32 %v815_v37, %v877_v29  ;;  %v4271_v44 = vand.u32 4294901760, %v4270_v38  ;;  %v5584_v10 = vsel %vm785_vm7, %v941_v9, 0  ;;  %vm11505_vm15 = vmor %vm8358_vm13, %vm8363_vm14 }
 0x17f   : > { %9908 = vmatprep.subr.bf16.mxu0 %v10494_v48  ;;  %v11399_v12 = vand.u32 4294901760, %v5584_v10 }
 0x180   : > { %928 = vst.msk [vmem:[#allocation3 + $0x68] sm:$0xff] %vm914_vm8, %v911_v18 }
 0x181   : > { %9371 = vmatmul.mubr.f32.vlgmr.msra.gmra.mrb[4].mxu1 %v3345_v13  ;;  %v942_v13 = vld [vmem:[#allocation3 + $0x58] sm:$0xff]  ;;  %v5654_v15 = vsub.f32 %v5584_v10, %v11399_v12 }
 0x182   : > { %9928 = vmatpush3.bf16.msra.mxu1 %v10860_v59  ;;  %9377 = vmatprep.mubr.msk.f32.mxu1 %vm10495_vm2, %v10496_v51  ;;  %v6046_v14 = vsel %vm785_vm7, %v942_v13, 0 }
 0x183   : > { %9929 = vmatprep.subr.bf16.mxu1 %v10494_v48  ;;  %v11411_v16 = vand.u32 4294901760, %v6046_v14  ;;  %v5655_v19 = vand.u32 4294901760, %v5654_v15  ;;  %v943_v20 = vld [vmem:[#allocation3 + $0x60] sm:$0xff] }
 0x184   : > { %v6508_v29 = vsel %vm785_vm7, %v943_v20, 0 }
 0x185   : > { %9336 = vmatmul.mubr.f32.vlgmr.msra.gmra.mrb[4].mxu0 %v11158_v63  ;;  %v6116_v21 = vsub.f32 %v6046_v14, %v11411_v16  ;;  %v5656_v22 = vsub.f32 %v5654_v15, %v5655_v19  ;;  %v11482_v49 = vand.u32 4294901760, %v6508_v29 }
 0x186   : > { %9911 = vmatpush3.bf16.msk.msra.mxu0 %vm10791_vm6, %v10796_v4  ;;  %9342 = vmatprep.mubr.msk.f32.mxu0 %vm10495_vm2, %v10496_v51 }
 0x187   : > { %9933 = vmatprep.subr.bf16.mxu0 %v10494_v48  ;;  %v6117_v60 = vand.u32 4294901760, %v6116_v21  ;;  %v5657_v23 = vand.u32 4294901760, %v5656_v22  ;;  %v11496_v37 = vsub.f32 %v6508_v29, %v11482_v49 }
 0x189   : > { %9378 = vmatmul.mubr.f32.vlgmr.msra.gmra.mrb[4].mxu1 %v11172_v8  ;;  %v6118_v61 = vsub.f32 %v6116_v21, %v6117_v60  ;;  %v6579_v39 = vand.u32 4294901760, %v11496_v37 }
 0x18a   : > { %9932 = vmatpush3.bf16.msk.msra.mxu1 %vm10791_vm6, %v10796_v4  ;;  %9384 = vmatprep.mubr.msk.f32.mxu1 %vm10495_vm2, %v10496_v51 }
 0x18b   : > { %9954 = vmatprep.subr.bf16.mxu1 %v10494_v48 }
 0x18d   : > { %9343 = vmatmul.mubr.f32.vlgmr.msra.gmra.mrb[4].mxu0 %v11158_v63 }
 0x18e   : > { %9936 = vmatpush3.bf16.msk.msra.mxu0 %vm10791_vm6, %v10796_v4  ;;  %9391 = vmatprep.mubr.msk.f32.mxu0 %vm10495_vm2, %v10496_v51 }
 0x18f   : > { %9937 = vmatprep.subr.bf16.mxu0 %v10494_v48 }
 0x191   : > { %9385 = vmatmul.mubr.f32.vlgmr.msra.gmra.mrb[4].mxu1 %v11172_v8  ;;  %9392 = vmatmul.mubr.f32.vlgmr.msra.gmra.mrb[6].mxu0 %v3809_v43 }
 0x192   : > { %9957 = vmatpush3.bf16.msk.msra.mxu1 %vm10791_vm6, %v10796_v4  ;;  %9939 = vmatpush3.bf16.msra.mxu0 %v10827_v25 }
 0x193   : > { %9433 = vmatprep.mubr.msk.f32.mxu1 %vm10495_vm2, %v10496_v51  ;;  %9958 = vmatprep.subr.bf16.mxu1 %v10494_v48 }
 0x194   : > { %9398 = vmatprep.mubr.msk.f32.mxu0 %vm10495_vm2, %v10496_v51  ;;  %9940 = vmatprep.subr.bf16.mxu0 %v10494_v48 }
 0x195   : > { %9434 = vmatmul.mubr.f32.vlgmr.msra.gmra.mrb[6].mxu1 %v4271_v44  ;;  %v752_v47 = vpop.permute.xlu1 %751 }
 0x196   : > { %9960 = vmatpush3.bf16.msra.mxu1 %v10827_v25  ;;  %9440 = vmatprep.mubr.msk.f32.mxu1 %vm10495_vm2, %v10496_v51  ;;  %v784_v11 = vmax.f32 %v11089_v42, %v752_v47  ;;  %v940_v42 = vld [vmem:[#allocation3 + $0x48] sm:$0xff] }
 0x197   : > { %9961 = vmatprep.subr.bf16.mxu1 %v10494_v48  ;;  %v5122_v57 = vsel %vm785_vm7, %v940_v42, 0 }
 0x198   : > { %801 = vst.msk [vmem:[#allocation3 + $0x78] sm:$0xff] %vm785_vm7, %v784_v11  ;;  %v11336_v46 = vand.u32 4294901760, %v5122_v57 }
 0x199   : > { %9399 = vmatmul.mubr.f32.vlgmr.msra.gmra.mrb[6].mxu0 %v11238_v17  ;;  %v881_v53 = vpop.permute.xlu1 %880 }
 0x19a   : > { %9942 = vmatpush3.bf16.msra.mxu0 %v10839_v28  ;;  %9405 = vmatprep.mubr.msk.f32.mxu0 %vm10495_vm2, %v10496_v51  ;;  %v5192_v2 = vsub.f32 %v5122_v57, %v11336_v46 }
 0x19b   : > { %9943 = vmatprep.subr.bf16.mxu0 %v10494_v48 }
 0x19c   : > { %v5193_v5 = vand.u32 4294901760, %v5192_v2 }
 0x19d   : > { %9441 = vmatmul.mubr.f32.vlgmr.msra.gmra.mrb[6].mxu1 %v11252_v32  ;;  %v750_v27 = vpop.permute.xlu0 %749 }
 0x19e   : > { %9963 = vmatpush3.bf16.msra.mxu1 %v10839_v28  ;;  %9447 = vmatprep.mubr.msk.f32.mxu1 %vm10495_vm2, %v10496_v51  ;;  %v783_v45 = vmax.f32 %v11081_v41, %v750_v27  ;;  %v4660_v41 = vsel %vm785_vm7, %v939_v50, 0  ;;  %v5194_v7 = vsub.f32 %v5192_v2, %v5193_v5 }
 0x19f   : > { %9964 = vmatprep.subr.bf16.mxu1 %v10494_v48  ;;  %v11323_v33 = vand.u32 4294901760, %v4660_v41  ;;  %v817_v63 = vld [vmem:[#allocation3 + $0x78] sm:$0xff] }
 0x1a0   : > { %800 = vst.msk [vmem:[#allocation3 + $0x70] sm:$0xff] %vm785_vm7, %v783_v45  ;;  %v913_v58 = vmax.f32 %v817_v63, %v881_v53  ;;  %v5195_v8 = vand.u32 4294901760, %v5194_v7  ;;  %v6580_v45 = vsub.f32 %v11496_v37, %v6579_v39 }
 0x1a1   : > { %9406 = vmatmul.mubr.f32.vlgmr.msra.gmra.mrb[6].mxu0 %v11246_v35  ;;  %v879_v52 = vpop.permute.xlu0 %878  ;;  %v4730_v54 = vsub.f32 %v4660_v41, %v11323_v33  ;;  %v944_v35 = vld [vmem:[#allocation3 + $0x68] sm:$0xff] }
 0x1a2   : > { %9946 = vmatpush3.bf16.msk.msra.mxu0 %vm10791_vm6, %v10796_v4  ;;  %9412 = vmatprep.mubr.msk.f32.mxu0 %vm10495_vm2, %v10496_v51  ;;  %930 = vst.msk [vmem:[#allocation3 + $0x78] sm:$0xff] %vm914_vm8, %v913_v58  ;;  %v6970_v36 = vsel %vm785_vm7, %v944_v35, 0  ;;  %v6581_v11 = vand.u32 4294901760, %v6580_v45 }
 0x1a3   : > { %9947 = vmatprep.subr.bf16.mxu0 %v10494_v48  ;;  %v4731_v0 = vand.u32 4294901760, %v4730_v54  ;;  %v11503_v56 = vand.u32 4294901760, %v6970_v36 }
 0x1a5   : > { %9448 = vmatmul.mubr.f32.vlgmr.msra.gmra.mrb[6].mxu1 %v4268_v34  ;;  %v4732_v3 = vsub.f32 %v4730_v54, %v4731_v0  ;;  %v7040_v43 = vsub.f32 %v6970_v36, %v11503_v56 }
 0x1a6   : > { %9967 = vmatpush3.bf16.msk.msra.mxu1 %vm10791_vm6, %v10796_v4  ;;  %9454 = vmatprep.mubr.msk.f32.mxu1 %vm10495_vm2, %v10496_v51 }
 0x1a7   : > { %9968 = vmatprep.subr.bf16.mxu1 %v10494_v48  ;;  %v816_v55 = vld [vmem:[#allocation3 + $0x70] sm:$0xff]  ;;  %v4733_v6 = vand.u32 4294901760, %v4732_v3  ;;  %v7041_v50 = vand.u32 4294901760, %v7040_v43 }
 0x1a8   : > { %v912_v62 = vmax.f32 %v816_v55, %v879_v52 }
 0x1a9   : > { %9413 = vmatmul.mubr.f32.vlgmr.msra.gmra.mrb[6].mxu0 %v3807_v26  ;;  %v7042_v41 = vsub.f32 %v7040_v43, %v7041_v50  ;;  %v946_v55 = vld [vmem:[#allocation3 + $0x78] sm:$0xff] }
 0x1aa   : > { %9949 = vmatpush3.bf16.msra.mxu0 %v10860_v59  ;;  %9419 = vmatprep.mubr.msk.f32.mxu0 %vm10495_vm2, %v10496_v51  ;;  %929 = vst.msk [vmem:[#allocation3 + $0x70] sm:$0xff] %vm914_vm8, %v912_v62  ;;  %v7894_v57 = vsel %vm785_vm7, %v946_v55, 0 }
 0x1ab   : > { %9950 = vmatprep.subr.bf16.mxu0 %v10494_v48  ;;  %v11594_v63 = vand.u32 4294901760, %v7894_v57 }
 0x1ad   : > { %9455 = vmatmul.mubr.f32.vlgmr.msra.gmra.mrb[6].mxu1 %v4269_v40  ;;  %v7964_v3 = vsub.f32 %v7894_v57, %v11594_v63 }
 0x1ae   : > { %9970 = vmatpush3.bf16.msra.mxu1 %v10860_v59  ;;  %9461 = vmatprep.mubr.msk.f32.mxu1 %vm10495_vm2, %v10496_v51 }
 0x1af   : > { %9971 = vmatprep.subr.bf16.mxu1 %v10494_v48  ;;  %v7965_v9 = vand.u32 4294901760, %v7964_v3 }
 0x1b1   : > { %9420 = vmatmul.mubr.f32.vlgmr.msra.gmra.mrb[6].mxu0 %v11238_v17  ;;  %v945_v42 = vld [vmem:[#allocation3 + $0x70] sm:$0xff] }
 0x1b2   : > { %9953 = vmatpush3.bf16.msk.msra.mxu0 %vm10791_vm6, %v10796_v4  ;;  %9426 = vmatprep.mubr.msk.f32.mxu0 %vm10495_vm2, %v10496_v51  ;;  %v7432_v52 = vsel %vm785_vm7, %v945_v42, 0 }
 0x1b3   : > { %9975 = vmatprep.subr.bf16.mxu0 %v10494_v48  ;;  %v11582_v53 = vand.u32 4294901760, %v7432_v52 }
 0x1b5   : > { %9462 = vmatmul.mubr.f32.vlgmr.msra.gmra.mrb[6].mxu1 %v11252_v32  ;;  %v7502_v62 = vsub.f32 %v7432_v52, %v11582_v53 }
 0x1b6   : > { %9974 = vmatpush3.bf16.msk.msra.mxu1 %vm10791_vm6, %v10796_v4  ;;  %9468 = vmatprep.mubr.msk.f32.mxu1 %vm10495_vm2, %v10496_v51 }
 0x1b7   : > { %9996 = vmatprep.subr.bf16.mxu1 %v10494_v48 }
 0x1b9   : > { %9427 = vmatmul.mubr.f32.vlgmr.msra.gmra.mrb[6].mxu0 %v11238_v17  ;;  %v6119_v17 = vand.u32 4294901760, %v6118_v61 }
 0x1ba   : > { %9978 = vmatpush3.bf16.msk.msra.mxu0 %vm10791_vm6, %v10796_v4  ;;  %9475 = vmatprep.mubr.msk.f32.mxu0 %vm10495_vm2, %v10496_v51 }
 0x1bb   : > { %9979 = vmatprep.subr.bf16.mxu0 %v10494_v48 }
 0x1bd   : > { %9469 = vmatmul.mubr.f32.vlgmr.msra.gmra.mrb[6].mxu1 %v11252_v32  ;;  %9476 = vmatmul.mubr.f32.vlgmr.msra.gmra.mrb[8].mxu0 %v4733_v6 }
 0x1be   : > { %9999 = vmatpush3.bf16.msk.msra.mxu1 %vm10791_vm6, %v10796_v4  ;;  %9981 = vmatpush3.bf16.msra.mxu0 %v10827_v25 }
 0x1bf   : > { %9517 = vmatprep.mubr.msk.f32.mxu1 %vm10495_vm2, %v10496_v51  ;;  %10000 = vmatprep.subr.bf16.mxu1 %v10494_v48 }
 0x1c0   : > { %9482 = vmatprep.mubr.msk.f32.mxu0 %vm10495_vm2, %v10496_v51  ;;  %9982 = vmatprep.subr.bf16.mxu0 %v10494_v48 }
 0x1c1   : > { %9518 = vmatmul.mubr.f32.vlgmr.msra.gmra.mrb[8].mxu1 %v5195_v8 }
 0x1c2   : > { %10002 = vmatpush3.bf16.msra.mxu1 %v10827_v25  ;;  %9524 = vmatprep.mubr.msk.f32.mxu1 %vm10495_vm2, %v10496_v51 }
 0x1c3   : > { %10003 = vmatprep.subr.bf16.mxu1 %v10494_v48 }
 0x1c5   : > { %9483 = vmatmul.mubr.f32.vlgmr.msra.gmra.mrb[8].mxu0 %v11323_v33 }
 0x1c6   : > { %9984 = vmatpush3.bf16.msra.mxu0 %v10839_v28  ;;  %9489 = vmatprep.mubr.msk.f32.mxu0 %vm10495_vm2, %v10496_v51 }
 0x1c7   : > { %9985 = vmatprep.subr.bf16.mxu0 %v10494_v48 }
 0x1c9   : > { %9525 = vmatmul.mubr.f32.vlgmr.msra.gmra.mrb[8].mxu1 %v11336_v46 }
 0x1ca   : > { %10005 = vmatpush3.bf16.msra.mxu1 %v10839_v28  ;;  %9531 = vmatprep.mubr.msk.f32.mxu1 %vm10495_vm2, %v10496_v51 }
 0x1cb   : > { %10006 = vmatprep.subr.bf16.mxu1 %v10494_v48 }
 0x1cd   : > { %9490 = vmatmul.mubr.f32.vlgmr.msra.gmra.mrb[8].mxu0 %v4730_v54 }
 0x1ce   : > { %9988 = vmatpush3.bf16.msk.msra.mxu0 %vm10791_vm6, %v10796_v4  ;;  %9496 = vmatprep.mubr.msk.f32.mxu0 %vm10495_vm2, %v10496_v51 }
 0x1cf   : > { %9989 = vmatprep.subr.bf16.mxu0 %v10494_v48 }
 0x1d1   : > { %9532 = vmatmul.mubr.f32.vlgmr.msra.gmra.mrb[8].mxu1 %v5192_v2 }
 0x1d2   : > { %10009 = vmatpush3.bf16.msk.msra.mxu1 %vm10791_vm6, %v10796_v4  ;;  %9538 = vmatprep.mubr.msk.f32.mxu1 %vm10495_vm2, %v10496_v51 }
 0x1d3   : > { %10010 = vmatprep.subr.bf16.mxu1 %v10494_v48 }
 0x1d5   : > { %9497 = vmatmul.mubr.f32.vlgmr.msra.gmra.mrb[8].mxu0 %v4731_v0  ;;  %v7503_v0 = vand.u32 4294901760, %v7502_v62 }
 0x1d6   : > { %9991 = vmatpush3.bf16.msra.mxu0 %v10860_v59  ;;  %9503 = vmatprep.mubr.msk.f32.mxu0 %vm10495_vm2, %v10496_v51 }
 0x1d7   : > { %9992 = vmatprep.subr.bf16.mxu0 %v10494_v48  ;;  %v7504_v8 = vsub.f32 %v7502_v62, %v7503_v0 }
 0x1d9   : > { %9539 = vmatmul.mubr.f32.vlgmr.msra.gmra.mrb[8].mxu1 %v5193_v5  ;;  %v7505_v10 = vand.u32 4294901760, %v7504_v8 }
 0x1da   : > { %10012 = vmatpush3.bf16.msra.mxu1 %v10860_v59  ;;  %9545 = vmatprep.mubr.msk.f32.mxu1 %vm10495_vm2, %v10496_v51 }
 0x1db   : > { %10013 = vmatprep.subr.bf16.mxu1 %v10494_v48 }
 0x1dd   : > { %9504 = vmatmul.mubr.f32.vlgmr.msra.gmra.mrb[8].mxu0 %v11323_v33 }
 0x1de   : > { %9995 = vmatpush3.bf16.msk.msra.mxu0 %vm10791_vm6, %v10796_v4  ;;  %9510 = vmatprep.mubr.msk.f32.mxu0 %vm10495_vm2, %v10496_v51 }
 0x1df   : > { %10017 = vmatprep.subr.bf16.mxu0 %v10494_v48 }
 0x1e1   : > { %9546 = vmatmul.mubr.f32.vlgmr.msra.gmra.mrb[8].mxu1 %v11336_v46 }
 0x1e2   : > { %10016 = vmatpush3.bf16.msk.msra.mxu1 %vm10791_vm6, %v10796_v4  ;;  %9552 = vmatprep.mubr.msk.f32.mxu1 %vm10495_vm2, %v10496_v51 }
 0x1e3   : > { %10038 = vmatprep.subr.bf16.mxu1 %v10494_v48 }
 0x1e5   : > { %9511 = vmatmul.mubr.f32.vlgmr.msra.gmra.mrb[8].mxu0 %v11323_v33  ;;  %v7043_v33 = vand.u32 4294901760, %v7042_v41 }
 0x1e6   : > { %10020 = vmatpush3.bf16.msk.msra.mxu0 %vm10791_vm6, %v10796_v4  ;;  %9559 = vmatprep.mubr.msk.f32.mxu0 %vm10495_vm2, %v10496_v51 }
 0x1e7   : > { %10021 = vmatprep.subr.bf16.mxu0 %v10494_v48 }
 0x1e9   : > { %9553 = vmatmul.mubr.f32.vlgmr.msra.gmra.mrb[8].mxu1 %v11336_v46  ;;  %9560 = vmatmul.mubr.f32.vlgmr.msra.gmra.mrb[10].mxu0 %v5657_v23 }
 0x1ea   : > { %10041 = vmatpush3.bf16.msk.msra.mxu1 %vm10791_vm6, %v10796_v4  ;;  %10023 = vmatpush3.bf16.msra.mxu0 %v10827_v25 }
 0x1eb   : > { %9601 = vmatprep.mubr.msk.f32.mxu1 %vm10495_vm2, %v10496_v51  ;;  %10042 = vmatprep.subr.bf16.mxu1 %v10494_v48 }
 0x1ec   : > { %9566 = vmatprep.mubr.msk.f32.mxu0 %vm10495_vm2, %v10496_v51  ;;  %10024 = vmatprep.subr.bf16.mxu0 %v10494_v48 }
 0x1ed   : > { %9602 = vmatmul.mubr.f32.vlgmr.msra.gmra.mrb[10].mxu1 %v6119_v17 }
 0x1ee   : > { %10044 = vmatpush3.bf16.msra.mxu1 %v10827_v25  ;;  %9608 = vmatprep.mubr.msk.f32.mxu1 %vm10495_vm2, %v10496_v51 }
 0x1ef   : > { %10045 = vmatprep.subr.bf16.mxu1 %v10494_v48 }
 0x1f1   : > { %9567 = vmatmul.mubr.f32.vlgmr.msra.gmra.mrb[10].mxu0 %v11399_v12 }
 0x1f2   : > { %10026 = vmatpush3.bf16.msra.mxu0 %v10839_v28  ;;  %9573 = vmatprep.mubr.msk.f32.mxu0 %vm10495_vm2, %v10496_v51 }
 0x1f3   : > { %10027 = vmatprep.subr.bf16.mxu0 %v10494_v48 }
 0x1f5   : > { %9609 = vmatmul.mubr.f32.vlgmr.msra.gmra.mrb[10].mxu1 %v11411_v16 }
 0x1f6   : > { %10047 = vmatpush3.bf16.msra.mxu1 %v10839_v28  ;;  %9615 = vmatprep.mubr.msk.f32.mxu1 %vm10495_vm2, %v10496_v51 }
 0x1f7   : > { %10048 = vmatprep.subr.bf16.mxu1 %v10494_v48 }
 0x1f9   : > { %9574 = vmatmul.mubr.f32.vlgmr.msra.gmra.mrb[10].mxu0 %v5654_v15 }
 0x1fa   : > { %10030 = vmatpush3.bf16.msk.msra.mxu0 %vm10791_vm6, %v10796_v4  ;;  %9580 = vmatprep.mubr.msk.f32.mxu0 %vm10495_vm2, %v10496_v51 }
 0x1fb   : > { %10031 = vmatprep.subr.bf16.mxu0 %v10494_v48 }
 0x1fd   : > { %9616 = vmatmul.mubr.f32.vlgmr.msra.gmra.mrb[10].mxu1 %v6116_v21 }
 0x1fe   : > { %10051 = vmatpush3.bf16.msk.msra.mxu1 %vm10791_vm6, %v10796_v4  ;;  %9622 = vmatprep.mubr.msk.f32.mxu1 %vm10495_vm2, %v10496_v51 }
 0x1ff   : > { %10052 = vmatprep.subr.bf16.mxu1 %v10494_v48 }
 0x201   : > { %9581 = vmatmul.mubr.f32.vlgmr.msra.gmra.mrb[10].mxu0 %v5655_v19 }
 0x202   : > { %10033 = vmatpush3.bf16.msra.mxu0 %v10860_v59  ;;  %9587 = vmatprep.mubr.msk.f32.mxu0 %vm10495_vm2, %v10496_v51 }
 0x203   : > { %10034 = vmatprep.subr.bf16.mxu0 %v10494_v48 }
 0x205   : > { %9623 = vmatmul.mubr.f32.vlgmr.msra.gmra.mrb[10].mxu1 %v6117_v60 }
 0x206   : > { %10054 = vmatpush3.bf16.msra.mxu1 %v10860_v59  ;;  %9629 = vmatprep.mubr.msk.f32.mxu1 %vm10495_vm2, %v10496_v51 }
 0x207   : > { %10055 = vmatprep.subr.bf16.mxu1 %v10494_v48 }
 0x208   : > { %v1421_v18 = vpop.f32.mrb[0].mxu0 }
 0x209   : > { %v8366_v26 = vmax.f32 %v1421_v18, 0.0  ;;  %v9176_v34 = vpop.f32.mrb[1].mxu0  ;;  %9588 = vmatmul.mubr.f32.vlgmr.msra.gmra.mrb[10].mxu0 %v11399_v12 }
 0x20a   : > { %10037 = vmatpush3.bf16.msk.msra.mxu0 %vm10791_vm6, %v10796_v4  ;;  %9594 = vmatprep.mubr.msk.f32.mxu0 %vm10495_vm2, %v10496_v51 }
 0x20b   : > { %v8382_v40 = vsel %vm11505_vm15, %v8366_v26, %v1421_v18  ;;  %10059 = vmatprep.subr.bf16.mxu0 %v10494_v48 }
 0x20c   : > { %8399 = vst.msk [vmem:[%s11520_s30] sm:$0xff] %vm8398_vm0, %v8382_v40  ;;  %v1883_v38 = vpop.f32.mrb[0].mxu1 }
 0x20d   : > { %v8367_v44 = vmax.f32 %v1883_v38, 0.0  ;;  %v9218_v27 = vpop.f32.mrb[1].mxu1  ;;  %9630 = vmatmul.mubr.f32.vlgmr.msra.gmra.mrb[10].mxu1 %v11411_v16 }
 0x20e   : > { %10058 = vmatpush3.bf16.msk.msra.mxu1 %vm10791_vm6, %v10796_v4  ;;  %9636 = vmatprep.mubr.msk.f32.mxu1 %vm10495_vm2, %v10496_v51 }
 0x20f   : > { %v8383_v47 = vsel %vm11505_vm15, %v8367_v44, %v1883_v38  ;;  %10080 = vmatprep.subr.bf16.mxu1 %v10494_v48 }
 0x210   : > { %8400 = vst.msk [vmem:[%s11520_s30 + $0x8] sm:$0xff] %vm8398_vm0, %v8383_v47 }
 0x211   : > { %9595 = vmatmul.mubr.f32.vlgmr.msra.gmra.mrb[10].mxu0 %v11399_v12  ;;  %v7966_v12 = vsub.f32 %v7964_v3, %v7965_v9 }
 0x212   : > { %10062 = vmatpush3.bf16.msk.msra.mxu0 %vm10791_vm6, %v10796_v4  ;;  %9643 = vmatprep.mubr.msk.f32.mxu0 %vm10495_vm2, %v10496_v51 }
 0x213   : > { %10063 = vmatprep.subr.bf16.mxu0 %v10494_v48  ;;  %v7967_v13 = vand.u32 4294901760, %v7966_v12 }
 0x215   : > { %9637 = vmatmul.mubr.f32.vlgmr.msra.gmra.mrb[10].mxu1 %v11411_v16  ;;  %9644 = vmatmul.mubr.f32.vlgmr.msra.gmra.mrb[12].mxu0 %v6581_v11 }
 0x216   : > { %10083 = vmatpush3.bf16.msk.msra.mxu1 %vm10791_vm6, %v10796_v4  ;;  %10065 = vmatpush3.bf16.msra.mxu0 %v10827_v25 }
 0x217   : > { %9685 = vmatprep.mubr.msk.f32.mxu1 %vm10495_vm2, %v10496_v51  ;;  %10084 = vmatprep.subr.bf16.mxu1 %v10494_v48 }
 0x218   : > { %9650 = vmatprep.mubr.msk.f32.mxu0 %vm10495_vm2, %v10496_v51  ;;  %10066 = vmatprep.subr.bf16.mxu0 %v10494_v48 }
 0x219   : > { %9686 = vmatmul.mubr.f32.vlgmr.msra.gmra.mrb[12].mxu1 %v7043_v33 }
 0x21a   : > { %10086 = vmatpush3.bf16.msra.mxu1 %v10827_v25  ;;  %9692 = vmatprep.mubr.msk.f32.mxu1 %vm10495_vm2, %v10496_v51 }
 0x21b   : > { %10087 = vmatprep.subr.bf16.mxu1 %v10494_v48 }
 0x21d   : > { %9651 = vmatmul.mubr.f32.vlgmr.msra.gmra.mrb[12].mxu0 %v11482_v49 }
 0x21e   : > { %10068 = vmatpush3.bf16.msra.mxu0 %v10839_v28  ;;  %9657 = vmatprep.mubr.msk.f32.mxu0 %vm10495_vm2, %v10496_v51 }
 0x21f   : > { %10069 = vmatprep.subr.bf16.mxu0 %v10494_v48 }
 0x221   : > { %9693 = vmatmul.mubr.f32.vlgmr.msra.gmra.mrb[12].mxu1 %v11503_v56 }
 0x222   : > { %10089 = vmatpush3.bf16.msra.mxu1 %v10839_v28  ;;  %9699 = vmatprep.mubr.msk.f32.mxu1 %vm10495_vm2, %v10496_v51 }
 0x223   : > { %10090 = vmatprep.subr.bf16.mxu1 %v10494_v48 }
 0x225   : > { %9658 = vmatmul.mubr.f32.vlgmr.msra.gmra.mrb[12].mxu0 %v11496_v37 }
 0x226   : > { %10072 = vmatpush3.bf16.msk.msra.mxu0 %vm10791_vm6, %v10796_v4  ;;  %9664 = vmatprep.mubr.msk.f32.mxu0 %vm10495_vm2, %v10496_v51 }
 0x227   : > { %10073 = vmatprep.subr.bf16.mxu0 %v10494_v48 }
 0x229   : > { %9700 = vmatmul.mubr.f32.vlgmr.msra.gmra.mrb[12].mxu1 %v7040_v43 }
 0x22a   : > { %10093 = vmatpush3.bf16.msk.msra.mxu1 %vm10791_vm6, %v10796_v4  ;;  %9706 = vmatprep.mubr.msk.f32.mxu1 %vm10495_vm2, %v10496_v51 }
 0x22b   : > { %10094 = vmatprep.subr.bf16.mxu1 %v10494_v48 }
 0x22d   : > { %9665 = vmatmul.mubr.f32.vlgmr.msra.gmra.mrb[12].mxu0 %v6579_v39 }
 0x22e   : > { %10075 = vmatpush3.bf16.msra.mxu0 %v10860_v59  ;;  %9671 = vmatprep.mubr.msk.f32.mxu0 %vm10495_vm2, %v10496_v51 }
 0x22f   : > { %10076 = vmatprep.subr.bf16.mxu0 %v10494_v48 }
 0x231   : > { %9707 = vmatmul.mubr.f32.vlgmr.msra.gmra.mrb[12].mxu1 %v7041_v50 }
 0x232   : > { %10096 = vmatpush3.bf16.msra.mxu1 %v10860_v59  ;;  %9713 = vmatprep.mubr.msk.f32.mxu1 %vm10495_vm2, %v10496_v51 }
 0x233   : > { %10097 = vmatprep.subr.bf16.mxu1 %v10494_v48 }
 0x234   : > { %v2345_v54 = vpop.f32.mrb[2].mxu0 }
 0x235   : > { %v8368_v58 = vmax.f32 %v2345_v54, 0.0  ;;  %v9260_v46 = vpop.f32.mrb[3].mxu0  ;;  %9672 = vmatmul.mubr.f32.vlgmr.msra.gmra.mrb[12].mxu0 %v11482_v49 }
 0x236   : > { %10079 = vmatpush3.bf16.msk.msra.mxu0 %vm10791_vm6, %v10796_v4  ;;  %9678 = vmatprep.mubr.msk.f32.mxu0 %vm10495_vm2, %v10496_v51 }
 0x237   : > { %v8384_v2 = vsel %vm11505_vm15, %v8368_v58, %v2345_v54  ;;  %10101 = vmatprep.subr.bf16.mxu0 %v10494_v48 }
 0x238   : > { %8401 = vst.msk [vmem:[%s11520_s30 + $0x10] sm:$0xff] %vm8398_vm0, %v8384_v2  ;;  %v2807_v5 = vpop.f32.mrb[2].mxu1 }
 0x239   : > { %v8369_v6 = vmax.f32 %v2807_v5, 0.0  ;;  %v9302_v7 = vpop.f32.mrb[3].mxu1  ;;  %9714 = vmatmul.mubr.f32.vlgmr.msra.gmra.mrb[12].mxu1 %v11503_v56 }
 0x23a   : > { %10100 = vmatpush3.bf16.msk.msra.mxu1 %vm10791_vm6, %v10796_v4  ;;  %9720 = vmatprep.mubr.msk.f32.mxu1 %vm10495_vm2, %v10496_v51 }
 0x23b   : > { %8402 = vst.msk [vmem:[%s11520_s30 + $0x18] sm:$0xff] %vm8398_vm0, %v8369_v6  ;;  %10122 = vmatprep.subr.bf16.mxu1 %v10494_v48 }
 0x23d   : > { %9679 = vmatmul.mubr.f32.vlgmr.msra.gmra.mrb[12].mxu0 %v11482_v49 }
 0x23e   : > { %10104 = vmatpush3.bf16.msk.msra.mxu0 %vm10791_vm6, %v10796_v4  ;;  %9727 = vmatprep.mubr.msk.f32.mxu0 %vm10495_vm2, %v10496_v51 }
 0x23f   : > { %10105 = vmatprep.subr.bf16.mxu0 %v10494_v48 }
 0x241   : > { %9721 = vmatmul.mubr.f32.vlgmr.msra.gmra.mrb[12].mxu1 %v11503_v56  ;;  %9728 = vmatmul.mubr.f32.vlgmr.msra.gmra.mrb[14].mxu0 %v7505_v10 }
 0x242   : > { %10125 = vmatpush3.bf16.msk.msra.mxu1 %vm10791_vm6, %v10796_v4  ;;  %10107 = vmatpush3.bf16.msra.mxu0 %v10827_v25 }
 0x243   : > { %9769 = vmatprep.mubr.msk.f32.mxu1 %vm10495_vm2, %v10496_v51  ;;  %10126 = vmatprep.subr.bf16.mxu1 %v10494_v48 }
 0x244   : > { %9734 = vmatprep.mubr.msk.f32.mxu0 %vm10495_vm2, %v10496_v51  ;;  %10108 = vmatprep.subr.bf16.mxu0 %v10494_v48 }
 0x245   : > { %9770 = vmatmul.mubr.f32.vlgmr.msra.gmra.mrb[14].mxu1 %v7967_v13 }
 0x246   : > { %10128 = vmatpush3.bf16.msra.mxu1 %v10827_v25  ;;  %9776 = vmatprep.mubr.msk.f32.mxu1 %vm10495_vm2, %v10496_v51 }
 0x247   : > { %10129 = vmatprep.subr.bf16.mxu1 %v10494_v48 }
 0x249   : > { %9735 = vmatmul.mubr.f32.vlgmr.msra.gmra.mrb[14].mxu0 %v11582_v53 }
 0x24a   : > { %10110 = vmatpush3.bf16.msra.mxu0 %v10839_v28  ;;  %9741 = vmatprep.mubr.msk.f32.mxu0 %vm10495_vm2, %v10496_v51 }
 0x24b   : > { %10111 = vmatprep.subr.bf16.mxu0 %v10494_v48 }
 0x24d   : > { %9777 = vmatmul.mubr.f32.vlgmr.msra.gmra.mrb[14].mxu1 %v11594_v63 }
 0x24e   : > { %10131 = vmatpush3.bf16.msra.mxu1 %v10839_v28  ;;  %9783 = vmatprep.mubr.msk.f32.mxu1 %vm10495_vm2, %v10496_v51 }
 0x24f   : > { %10132 = vmatprep.subr.bf16.mxu1 %v10494_v48 }
 0x251   : > { %9742 = vmatmul.mubr.f32.vlgmr.msra.gmra.mrb[14].mxu0 %v7502_v62 }
 0x252   : > { %10114 = vmatpush3.bf16.msk.msra.mxu0 %vm10791_vm6, %v10796_v4  ;;  %9748 = vmatprep.mubr.msk.f32.mxu0 %vm10495_vm2, %v10496_v51 }
 0x253   : > { %10115 = vmatprep.subr.bf16.mxu0 %v10494_v48 }
 0x255   : > { %9784 = vmatmul.mubr.f32.vlgmr.msra.gmra.mrb[14].mxu1 %v7964_v3 }
 0x256   : > { %10135 = vmatpush3.bf16.msk.msra.mxu1 %vm10791_vm6, %v10796_v4  ;;  %9790 = vmatprep.mubr.msk.f32.mxu1 %vm10495_vm2, %v10496_v51 }
 0x257   : > { %10136 = vmatprep.subr.bf16.mxu1 %v10494_v48 }
 0x259   : > { %9749 = vmatmul.mubr.f32.vlgmr.msra.gmra.mrb[14].mxu0 %v7503_v0 }
 0x25a   : > { %10117 = vmatpush3.bf16.msra.mxu0 %v10860_v59  ;;  %9755 = vmatprep.mubr.msk.f32.mxu0 %vm10495_vm2, %v10496_v51 }
 0x25b   : > { %10118 = vmatprep.subr.bf16.mxu0 %v10494_v48 }
 0x25d   : > { %9791 = vmatmul.mubr.f32.vlgmr.msra.gmra.mrb[14].mxu1 %v7965_v9 }
 0x25e   : > { %10138 = vmatpush3.bf16.msra.mxu1 %v10860_v59  ;;  %9797 = vmatprep.mubr.msk.f32.mxu1 %vm10495_vm2, %v10496_v51 }
 0x25f   : > { %10139 = vmatprep.subr.bf16.mxu1 %v10494_v48 }
 0x260   : > { %v3269_v25 = vpop.f32.mrb[4].mxu0 }
 0x261   : > { %v8370_v28 = vmax.f32 %v3269_v25, 0.0  ;;  %v9344_v14 = vpop.f32.mrb[5].mxu0  ;;  %9756 = vmatmul.mubr.f32.vlgmr.msra.gmra.mrb[14].mxu0 %v11582_v53 }
 0x262   : > { %10121 = vmatpush3.bf16.msk.msra.mxu0 %vm10791_vm6, %v10796_v4  ;;  %9762 = vmatprep.mubr.msk.f32.mxu0 %vm10495_vm2, %v10496_v51 }
 0x263   : > { %v8386_v59 = vsel %vm11505_vm15, %v8370_v28, %v3269_v25 }
 0x264   : > { %8403 = vst.msk [vmem:[%s11520_s30 + $0x20] sm:$0xff] %vm8398_vm0, %v8386_v59  ;;  %v3731_v48 = vpop.f32.mrb[4].mxu1 }
 0x265   : > { %v8371_v15 = vmax.f32 %v3731_v48, 0.0  ;;  %v9386_v16 = vpop.f32.mrb[5].mxu1  ;;  %9798 = vmatmul.mubr.f32.vlgmr.msra.gmra.mrb[14].mxu1 %v11594_v63 }
 0x266   : > { %10142 = vmatpush3.bf16.msk.msra.mxu1 %vm10791_vm6, %v10796_v4  ;;  %9804 = vmatprep.mubr.msk.f32.mxu1 %vm10495_vm2, %v10496_v51 }
 0x267   : > { %v8387_v19 = vsel %vm11505_vm15, %v8371_v15, %v3731_v48 }
 0x268   : > { %8404 = vst.msk [vmem:[%s11520_s30 + $0x28] sm:$0xff] %vm8398_vm0, %v8387_v19 }
 0x269   : > { %9763 = vmatmul.mubr.f32.vlgmr.msra.gmra.mrb[14].mxu0 %v11582_v53 }
 0x26d   : > { %9805 = vmatmul.mubr.f32.vlgmr.msra.gmra.mrb[14].mxu1 %v11594_v63 }
 0x28c   : > { %v4193_v21 = vpop.f32.mrb[6].mxu0 }
 0x28d   : > { %v8372_v22 = vmax.f32 %v4193_v21, 0.0  ;;  %v9428_v60 = vpop.f32.mrb[7].mxu0 }
 0x28f   : > { %v8388_v1 = vsel %vm11505_vm15, %v8372_v22, %v4193_v21 }
 0x290   : > { %8405 = vst.msk [vmem:[%s11520_s30 + $0x30] sm:$0xff] %vm8398_vm0, %v8388_v1  ;;  %v4655_v51 = vpop.f32.mrb[6].mxu1 }
 0x291   : > { %v8373_v4 = vmax.f32 %v4655_v51, 0.0  ;;  %v9470_v23 = vpop.f32.mrb[7].mxu1 }
 0x293   : > { %8406 = vst.msk [vmem:[%s11520_s30 + $0x38] sm:$0xff] %vm8398_vm0, %v8373_v4 }
 0x2b8   : > { %v5117_v61 = vpop.f32.mrb[8].mxu0 }
 0x2b9   : > { %v8374_v17 = vmax.f32 %v5117_v61, 0.0  ;;  %v9512_v20 = vpop.f32.mrb[9].mxu0 }
 0x2bb   : > { %v8390_v24 = vsel %vm11505_vm15, %v8374_v17, %v5117_v61 }
 0x2bc   : > { %8407 = vst.msk [vmem:[%s11520_s30 + $0x40] sm:$0xff] %vm8398_vm0, %v8390_v24  ;;  %v5579_v29 = vpop.f32.mrb[8].mxu1 }
 0x2bd   : > { %v8375_v30 = vmax.f32 %v5579_v29, 0.0  ;;  %v9554_v31 = vpop.f32.mrb[9].mxu1 }
 0x2bf   : > { %v8391_v49 = vsel %vm11505_vm15, %v8375_v30, %v5579_v29 }
 0x2c0   : > { %8408 = vst.msk [vmem:[%s11520_s30 + $0x48] sm:$0xff] %vm8398_vm0, %v8391_v49 }
 0x2e4   : > { %v6041_v35 = vpop.f32.mrb[10].mxu0 }
 0x2e5   : > { %v8376_v36 = vmax.f32 %v6041_v35, 0.0  ;;  %v9596_v37 = vpop.f32.mrb[11].mxu0 }
 0x2e7   : > { %v8392_v56 = vsel %vm11505_vm15, %v8376_v36, %v6041_v35 }
 0x2e8   : > { %8409 = vst.msk [vmem:[%s11520_s30 + $0x50] sm:$0xff] %vm8398_vm0, %v8392_v56  ;;  %v6503_v18 = vpop.f32.mrb[10].mxu1 }
 0x2e9   : > { %v8377_v26 = vmax.f32 %v6503_v18, 0.0  ;;  %v9638_v34 = vpop.f32.mrb[11].mxu1 }
 0x2eb   : > { %8410 = vst.msk [vmem:[%s11520_s30 + $0x58] sm:$0xff] %vm8398_vm0, %v8377_v26 }
 0x310   : > { %v6965_v39 = vpop.f32.mrb[12].mxu0 }
 0x311   : > { %v8378_v40 = vmax.f32 %v6965_v39, 0.0  ;;  %v9680_v43 = vpop.f32.mrb[13].mxu0 }
 0x313   : > { %v8394_v38 = vsel %vm11505_vm15, %v8378_v40, %v6965_v39 }
 0x314   : > { %8411 = vst.msk [vmem:[%s11520_s30 + $0x60] sm:$0xff] %vm8398_vm0, %v8394_v38  ;;  %v7427_v44 = vpop.f32.mrb[12].mxu1 }
 0x315   : > { %v8379_v27 = vmax.f32 %v7427_v44, 0.0  ;;  %v9722_v45 = vpop.f32.mrb[13].mxu1 }
 0x317   : > { %v8395_v47 = vsel %vm11505_vm15, %v8379_v27, %v7427_v44 }
 0x318   : > { %8412 = vst.msk [vmem:[%s11520_s30 + $0x68] sm:$0xff] %vm8398_vm0, %v8395_v47 }
 0x33c   : > { %v7889_v50 = vpop.f32.mrb[14].mxu0 }
 0x33d   : > { %v8380_v11 = vmax.f32 %v7889_v50, 0.0  ;;  %v9764_v41 = vpop.f32.mrb[15].mxu0 }
 0x33f   : > { %v8396_v33 = vsel %vm11505_vm15, %v8380_v11, %v7889_v50 }
 0x340   : > { %8413 = vst.msk [vmem:[%s11520_s30 + $0x70] sm:$0xff] %vm8398_vm0, %v8396_v33  ;;  %v8351_v42 = vpop.f32.mrb[14].mxu1 }
 0x341   : > { %v8381_v52 = vmax.f32 %v8351_v42, 0.0  ;;  %v9806_v53 = vpop.f32.mrb[15].mxu1 }
 0x343   : > { %8414 = vst.msk [vmem:[%s11520_s30 + $0x78] sm:$0xff] %vm8398_vm0, %v8381_v52 }
 0x344   : > { %10418 = shalt.err (!%p10415_p5)
}
 0x345   : > { %s10419_s24 = scalar_lea.hbm %s11728_s15, 2048  ;;  %s10423_s3 = scalar_lea.hbm %s11782_s1, 4096 }
 0x346   : > { %p10420_p4 = scmp.ne.s32.totalorder %s11728_s15, %s10419_s24  ;;  %p10424_p12 = scmp.lt.u32.totalorder %s11728_s15, %s11782_s1 }
 0x347   : > { %p10425_p1 = scmp.lt.u32.totalorder %s10423_s3, %s10419_s24  ;;  %p10427_p8 = scmp.lt.u32.totalorder %s10419_s24, %s11728_s15 }
 0x348   : > { %p10421_p7 = pnand %p10420_p4, %p11798_p9 }
 0x349   : > { %p10426_p3 = por %p10425_p1, %p10424_p12 }
 0x34a   : > { %p10422_p10 = pneg %p10421_p7 }
 0x34b   : > { %p10428_p11 = por %p10427_p8, %p10426_p3 }
 0x34d   : > { %p10429_p0 = pnand %p10428_p11, %p10422_p10 }
 0x34f   : > { %10432 = shalt.err (!%p10429_p0)
}
 0x350   : > { %s10499_s27 = smov 128   ;;  %s10500_s29 = smov 8  }
 0x351   : > { %10305 = dma.vmem_to_hbm [thread:$0]  (%p11798_p9), %s11730_s5, 2048, %s11728_s15, %s8416_s9, %s10499_s27, %s10499_s27, %s10500_s29  }
 0x352 PF: > { %s8447_s30 = sand.u32 1, %s10467_s6   ;;  %p11799_p6 = scmp.ne.s32.totalorder %s11787_s21, 0 }
 0x353   : > { %p11800_p13 = scmp.ge.s32.totalorder %s10487_s11, 2  ;;  %s8448_s2 = scalar_lea.sflag [#allocation6], %s8447_s30 }
 0x355   : > { %p10312_p2 = pnand %p11800_p13, %p11799_p6 }
 0x357   : > { %10462 = dma.done.wait (!%p10312_p2), %s8448_s2, 2048  }
 0x358   : > { %10464 = vsyncadd (!%p10312_p2), %s8448_s2, 4294965248  ;;  %s17_s11 = sadd.s32 1, %s10487_s11   ;;  %s11801_s6 = smov %s10471_s7 }
 0x359   : > { %p14_p5 = scmp.ge.s32.totalorder %s17_s11, 4   ;;  %s11802_s7 = smov %s10475_s8 }
 0x35a   : > { %s11803_s8 = smov %s10567_s20  ;;  %s11804_s9 = smov %s10483_s10 }
 0x35b   : > { %s11805_s10 = smov %s11807_s14  ;;  %16 = sbr.rel (!%p14_p5) target bundleno = 6 (0x6), region = 200 }
 0x362   :  { %8453 = vsyncpa [#allocation5], 1 }
 0x363   :  { %8455 = vsyncpa [#allocation5 + $0x1], 1 }
 0x364   :  { %8456 = vsyncpa [#allocation6], 1 }
 0x365   :  { %8458 = vsyncpa [#allocation6 + $0x1], 1 }

</bundles_post_ra>
